<compile_context>
chip_gen: v6e
topology: v6e:2x2x1
jax: 0.10.0
libtpu: 0.0.40
codegen_flags: <defaults>
</compile_context>

<pallas_src>
import jax
import jax.numpy as jnp
from jax import lax
from jax.experimental import pallas as pl
from jax.experimental.pallas import tpu as pltpu


def _dw_stride2_axis1(x, w4):
    """Depthwise conv along axis 1: kernel 4, stride 2, zero-pad 1 (per channel).

    x:  (N, L, M, C) float32 value, L even.
    w4: (4, 1, 1, C) per-channel taps (pre-shaped in the wrapper).
    Returns (N, L//2, M, C).
    """
    n, l, m, c = x.shape
    l2 = l // 2
    # Functional zero pad on a MAJOR dim: no scratch buffer, no masked store.
    zrow = jnp.zeros((n, 1, m, c), x.dtype)
    xp = jnp.concatenate([zrow, x, zrow], axis=1)          # (N, L+2, M, C)
    # Major-dim split (no relayout): xr[:, a, b] == xp[:, 2a+b]
    xr = xp.reshape(n, (l + 2) // 2, 2, m, c)
    # out[i] = sum_k xp[2i+k] * w4[k]   (even/odd decomposition, VPU FMAs)
    y = xr[:, 0:l2, 0] * w4[0]
    y = y + xr[:, 0:l2, 1] * w4[1]
    y = y + xr[:, 1:1 + l2, 0] * w4[2]
    y = y + xr[:, 1:1 + l2, 1] * w4[3]
    return y


def _one_block(a, wf, wt, wpf, bias, flipped):
    """One Freq_Time_Depthwise_Block on a VMEM-resident value.

    a:       (N, H, W, C) if not flipped, else (N, W, H, C)
    wf, wt:  (4, 1, 1, Cin) depthwise freq / time taps
    wpf:     (Cin, Cout) pointwise weights with BN scale pre-folded
    bias:    (1, Cout) folded BN bias
    Output layout flips relative to the input layout (single transpose/block).
    """
    if not flipped:
        y = _dw_stride2_axis1(a, wf)            # freq conv over H (axis 1)
        y = jnp.transpose(y, (0, 2, 1, 3))      # (N,H2,W,C) -> (N,W,H2,C)  [XLU]
        z = _dw_stride2_axis1(y, wt)            # time conv over W (axis 1)
        # z layout: (N, W2, H2, C)   -> flipped
    else:
        y = _dw_stride2_axis1(a, wt)            # time conv over W (axis 1)
        y = jnp.transpose(y, (0, 2, 1, 3))      # (N,W2,H,C) -> (N,H,W2,C)  [XLU]
        z = _dw_stride2_axis1(y, wf)            # freq conv over H (axis 1)
        # z layout: (N, H2, W2, C)   -> standard
    n, d1, d2, cin = z.shape
    cout = wpf.shape[1]
    # Pointwise 1x1 conv (BN scale folded into wpf) + bias + ReLU.
    o = jnp.dot(z.reshape(n * d1 * d2, cin), wpf,
                preferred_element_type=jnp.float32)
    o = jnp.maximum(o + bias, 0.0)
    return o.reshape(n, d1, d2, cout)


def freq_time_pooled_extractor(x_nchw, params):
    """Forward pass of Freq_Time_Pooled_Extractor. Input/output NCHW (PyTorch)."""
    # NCHW -> NHWC in the wrapper: one tiny XLA op; a 4-D relayout transpose
    # inside the Mosaic kernel buys nothing here.
    x = jnp.transpose(x_nchw, (0, 2, 3, 1)).astype(jnp.float32)
    n, h, w, cin = x.shape
    nb = len(params)
    cout = params[-1][2].shape[1]

    hh, ww = h, w
    for _ in params:
        assert hh % 2 == 0 and ww % 2 == 0, "H/W must be even at every block"
        hh //= 2
        ww //= 2
    flipped_final = (nb % 2 == 1)            # layout after the last block

    flat_params = [p for blk in params for p in blk]
    vmem = pl.BlockSpec(memory_space=pltpu.MemorySpace.VMEM)

    def fused_kernel(*refs):
        # refs = (x, wf0, wt0, wpf0, bias0, ..., wf{nb-1}, ..., o)
        x_ref = refs[0]
        p_refs = refs[1:1 + 4 * nb]
        o_ref = refs[1 + 4 * nb]
        a = x_ref[...]
        for b in range(nb):
            wf = p_refs[4 * b][...]
            wt = p_refs[4 * b + 1][...]
            wpf = p_refs[4 * b + 2][...]
            bias = p_refs[4 * b + 3][...]
            a = _one_block(a, wf, wt, wpf, bias, flipped=(b % 2 == 1))
        o_ref[...] = a

    # Kernel output is whatever layout the last block produced; wrapper fixes it.
    d1, d2 = (ww, hh) if flipped_final else (hh, ww)
    out = pl.pallas_call(
        fused_kernel,
        out_shape=jax.ShapeDtypeStruct((n, d1, d2, cout), jnp.float32),
        in_specs=[vmem] * (1 + 4 * nb),
        out_specs=vmem,
    )(x, *flat_params)

    if flipped_final:
        return jnp.transpose(out, (0, 3, 2, 1))   # (N,Wf,Hf,C) -> NCHW
    return jnp.transpose(out, (0, 3, 1, 2))       # NHWC -> NCHW


# ------------------------------ parameters ------------------------------
def init_block_params(key, cin, cout):
    k1, k2, k3, k4, k5 = jax.random.split(key, 5)
    # Depthwise taps pre-shaped (4,1,1,Cin) so the kernel uses them directly.
    wf = 0.2 * jax.random.normal(k1, (4, 1, 1, cin), jnp.float32)
    wt = 0.2 * jax.random.normal(k2, (4, 1, 1, cin), jnp.float32)
    wp = jax.random.normal(k3, (cin, cout), jnp.float32) / jnp.sqrt(cin)
    gamma = 1.0 + 0.1 * jax.random.normal(k4, (cout,), jnp.float32)
    beta = 0.1 * jax.random.normal(k5, (cout,), jnp.float32)
    running_mean = jnp.zeros((cout,), jnp.float32)
    running_var = jnp.ones((cout,), jnp.float32)
    scale = gamma / jnp.sqrt(running_var + 1e-5)
    wp_folded = wp * scale[None, :]                       # fold BN (eval mode)
    bias = (beta - running_mean * scale).reshape(1, cout)
    return wf, wt, wp_folded, bias


def init_extractor_params(key, input_image_channels, out_channels, nb_blocks=4):
    params = []
    cin = input_image_channels
    for _ in range(nb_blocks):
        key, sub = jax.random.split(key)
        params.append(init_block_params(sub, cin, out_channels))
        cin = out_channels
    return params


# ---------------- pure-JAX reference (for self-check only) ----------------
def _ref_block(x_nhwc, wf, wt, wpf, bias):
    cin = x_nhwc.shape[-1]
    rf = wf                                   # (4,1,1,Cin) is HWIO depthwise
    rt = jnp.transpose(wt, (1, 0, 2, 3))      # (1,4,1,Cin)
    y = lax.conv_general_dilated(
        x_nhwc, rf, window_strides=(2, 1), padding=((1, 1), (0, 0)),
        dimension_numbers=("NHWC", "HWIO", "NHWC"), feature_group_count=cin)
    z = lax.conv_general_dilated(
        y, rt, window_strides=(1, 2), padding=((0, 0), (1, 1)),
        dimension_numbers=("NHWC", "HWIO", "NHWC"), feature_group_count=cin)
    o = jnp.einsum("nhwc,cd->nhwd", z, wpf) + bias[0]
    return jnp.maximum(o, 0.0)


def ref_extractor(x_nchw, params):
    x = jnp.transpose(x_nchw, (0, 2, 3, 1)).astype(jnp.float32)
    for p in params:
        x = _ref_block(x, *p)
    return jnp.transpose(x, (0, 3, 1, 2))


if __name__ == "__main__":
    key = jax.random.PRNGKey(0)
    k_x, k_p = jax.random.split(key)

    # small shapes consistent with the module: NCHW spectrogram-like input
    batch, in_ch, freq, time = 2, 4, 16, 16
    out_channels, nb_blocks = 16, 4

    x = jax.random.normal(k_x, (batch, in_ch, freq, time), jnp.float32)
    params = init_extractor_params(k_p, in_ch, out_channels, nb_blocks)

    fwd = jax.jit(freq_time_pooled_extractor)
    out = jax.block_until_ready(fwd(x, params))
    assert out.shape == (batch, out_channels, freq >> nb_blocks, time >> nb_blocks)

    ref = jax.block_until_ready(ref_extractor(x, params))
    max_err = float(jnp.max(jnp.abs(out - ref)))
    assert max_err < 1e-3, f"mismatch vs reference: {max_err}"

    print("KERNEL_OK")
</pallas_src>

<mosaic_0001>
module attributes {stable_mosaic.version = 11 : i64} {
  func.func @fused_kernel(%arg0: memref<2x16x16x4xf32, #tpu.memory_space<vmem>>, %arg1: memref<4x1x1x4xf32, #tpu.memory_space<vmem>>, %arg2: memref<4x1x1x4xf32, #tpu.memory_space<vmem>>, %arg3: memref<4x16xf32, #tpu.memory_space<vmem>>, %arg4: memref<1x16xf32, #tpu.memory_space<vmem>>, %arg5: memref<4x1x1x16xf32, #tpu.memory_space<vmem>>, %arg6: memref<4x1x1x16xf32, #tpu.memory_space<vmem>>, %arg7: memref<16x16xf32, #tpu.memory_space<vmem>>, %arg8: memref<1x16xf32, #tpu.memory_space<vmem>>, %arg9: memref<4x1x1x16xf32, #tpu.memory_space<vmem>>, %arg10: memref<4x1x1x16xf32, #tpu.memory_space<vmem>>, %arg11: memref<16x16xf32, #tpu.memory_space<vmem>>, %arg12: memref<1x16xf32, #tpu.memory_space<vmem>>, %arg13: memref<4x1x1x16xf32, #tpu.memory_space<vmem>>, %arg14: memref<4x1x1x16xf32, #tpu.memory_space<vmem>>, %arg15: memref<16x16xf32, #tpu.memory_space<vmem>>, %arg16: memref<1x16xf32, #tpu.memory_space<vmem>>, %arg17: memref<2x1x1x16xf32, #tpu.memory_space<vmem>>) attributes {dimension_semantics = [], scalar_prefetch = 0 : i64, scratch_operands = 0 : i64, tpu.core_type = #tpu.core_type<tc>} {
    %c0 = arith.constant 0 : index
    %c0_0 = arith.constant 0 : index
    %c0_1 = arith.constant 0 : index
    %c0_2 = arith.constant 0 : index
    %0 = vector.load %arg0[%c0, %c0_0, %c0_1, %c0_2] : memref<2x16x16x4xf32, #tpu.memory_space<vmem>>, vector<2x16x16x4xf32>
    %c0_3 = arith.constant 0 : index
    %c0_4 = arith.constant 0 : index
    %c0_5 = arith.constant 0 : index
    %c0_6 = arith.constant 0 : index
    %1 = vector.load %arg1[%c0_3, %c0_4, %c0_5, %c0_6] : memref<4x1x1x4xf32, #tpu.memory_space<vmem>>, vector<4x1x1x4xf32>
    %c0_7 = arith.constant 0 : index
    %c0_8 = arith.constant 0 : index
    %c0_9 = arith.constant 0 : index
    %c0_10 = arith.constant 0 : index
    %2 = vector.load %arg2[%c0_7, %c0_8, %c0_9, %c0_10] : memref<4x1x1x4xf32, #tpu.memory_space<vmem>>, vector<4x1x1x4xf32>
    %c0_11 = arith.constant 0 : index
    %c0_12 = arith.constant 0 : index
    %3 = vector.load %arg3[%c0_11, %c0_12] : memref<4x16xf32, #tpu.memory_space<vmem>>, vector<4x16xf32>
    %c0_13 = arith.constant 0 : index
    %c0_14 = arith.constant 0 : index
    %4 = vector.load %arg4[%c0_13, %c0_14] : memref<1x16xf32, #tpu.memory_space<vmem>>, vector<1x16xf32>
    %cst = arith.constant 0.000000e+00 : f32
    %5 = vector.broadcast %cst : f32 to vector<2x1x16x4xf32>
    %6 = tpu.concatenate %5, %0, %5 in 1 : vector<2x1x16x4xf32>, vector<2x16x16x4xf32>, vector<2x1x16x4xf32> -> vector<2x18x16x4xf32>
    %7 = vector.shape_cast %6 : vector<2x18x16x4xf32> to vector<2x9x2x16x4xf32>
    %8 = vector.extract_strided_slice %7 {offsets = [0, 0, 0, 0, 0], sizes = [2, 8, 1, 16, 4], strides = [1, 1, 1, 1, 1]} : vector<2x9x2x16x4xf32> to vector<2x8x1x16x4xf32>
    %9 = vector.shape_cast %8 : vector<2x8x1x16x4xf32> to vector<2x8x16x4xf32>
    %10 = vector.extract_strided_slice %1 {offsets = [0, 0, 0, 0], sizes = [1, 1, 1, 4], strides = [1, 1, 1, 1]} : vector<4x1x1x4xf32> to vector<1x1x1x4xf32>
    %11 = vector.shape_cast %10 : vector<1x1x1x4xf32> to vector<1x1x4xf32>
    %12 = vector.shape_cast %11 : vector<1x1x4xf32> to vector<1x1x1x4xf32>
    %13 = vector.broadcast %12 : vector<1x1x1x4xf32> to vector<2x8x16x4xf32>
    %14 = arith.mulf %9, %13 : vector<2x8x16x4xf32>
    %15 = vector.extract_strided_slice %7 {offsets = [0, 0, 1, 0, 0], sizes = [2, 8, 1, 16, 4], strides = [1, 1, 1, 1, 1]} : vector<2x9x2x16x4xf32> to vector<2x8x1x16x4xf32>
    %16 = vector.shape_cast %15 : vector<2x8x1x16x4xf32> to vector<2x8x16x4xf32>
    %17 = vector.extract_strided_slice %1 {offsets = [1, 0, 0, 0], sizes = [1, 1, 1, 4], strides = [1, 1, 1, 1]} : vector<4x1x1x4xf32> to vector<1x1x1x4xf32>
    %18 = vector.shape_cast %17 : vector<1x1x1x4xf32> to vector<1x1x4xf32>
    %19 = vector.shape_cast %18 : vector<1x1x4xf32> to vector<1x1x1x4xf32>
    %20 = vector.broadcast %19 : vector<1x1x1x4xf32> to vector<2x8x16x4xf32>
    %21 = arith.mulf %16, %20 : vector<2x8x16x4xf32>
    %22 = arith.addf %14, %21 : vector<2x8x16x4xf32>
    %23 = vector.extract_strided_slice %7 {offsets = [0, 1, 0, 0, 0], sizes = [2, 8, 1, 16, 4], strides = [1, 1, 1, 1, 1]} : vector<2x9x2x16x4xf32> to vector<2x8x1x16x4xf32>
    %24 = vector.shape_cast %23 : vector<2x8x1x16x4xf32> to vector<2x8x16x4xf32>
    %25 = vector.extract_strided_slice %1 {offsets = [2, 0, 0, 0], sizes = [1, 1, 1, 4], strides = [1, 1, 1, 1]} : vector<4x1x1x4xf32> to vector<1x1x1x4xf32>
    %26 = vector.shape_cast %25 : vector<1x1x1x4xf32> to vector<1x1x4xf32>
    %27 = vector.shape_cast %26 : vector<1x1x4xf32> to vector<1x1x1x4xf32>
    %28 = vector.broadcast %27 : vector<1x1x1x4xf32> to vector<2x8x16x4xf32>
    %29 = arith.mulf %24, %28 : vector<2x8x16x4xf32>
    %30 = arith.addf %22, %29 : vector<2x8x16x4xf32>
    %31 = vector.extract_strided_slice %7 {offsets = [0, 1, 1, 0, 0], sizes = [2, 8, 1, 16, 4], strides = [1, 1, 1, 1, 1]} : vector<2x9x2x16x4xf32> to vector<2x8x1x16x4xf32>
    %32 = vector.shape_cast %31 : vector<2x8x1x16x4xf32> to vector<2x8x16x4xf32>
    %33 = vector.extract_strided_slice %1 {offsets = [3, 0, 0, 0], sizes = [1, 1, 1, 4], strides = [1, 1, 1, 1]} : vector<4x1x1x4xf32> to vector<1x1x1x4xf32>
    %34 = vector.shape_cast %33 : vector<1x1x1x4xf32> to vector<1x1x4xf32>
    %35 = vector.shape_cast %34 : vector<1x1x4xf32> to vector<1x1x1x4xf32>
    %36 = vector.broadcast %35 : vector<1x1x1x4xf32> to vector<2x8x16x4xf32>
    %37 = arith.mulf %32, %36 : vector<2x8x16x4xf32>
    %38 = arith.addf %30, %37 : vector<2x8x16x4xf32>
    %39 = tpu.transpose %38, [0, 2, 1, 3] : vector<2x8x16x4xf32> -> vector<2x16x8x4xf32>
    %cst_15 = arith.constant 0.000000e+00 : f32
    %40 = vector.broadcast %cst_15 : f32 to vector<2x1x8x4xf32>
    %41 = tpu.concatenate %40, %39, %40 in 1 : vector<2x1x8x4xf32>, vector<2x16x8x4xf32>, vector<2x1x8x4xf32> -> vector<2x18x8x4xf32>
    %42 = vector.shape_cast %41 : vector<2x18x8x4xf32> to vector<2x9x2x8x4xf32>
    %43 = vector.extract_strided_slice %42 {offsets = [0, 0, 0, 0, 0], sizes = [2, 8, 1, 8, 4], strides = [1, 1, 1, 1, 1]} : vector<2x9x2x8x4xf32> to vector<2x8x1x8x4xf32>
    %44 = vector.shape_cast %43 : vector<2x8x1x8x4xf32> to vector<2x8x8x4xf32>
    %45 = vector.extract_strided_slice %2 {offsets = [0, 0, 0, 0], sizes = [1, 1, 1, 4], strides = [1, 1, 1, 1]} : vector<4x1x1x4xf32> to vector<1x1x1x4xf32>
    %46 = vector.shape_cast %45 : vector<1x1x1x4xf32> to vector<1x1x4xf32>
    %47 = vector.shape_cast %46 : vector<1x1x4xf32> to vector<1x1x1x4xf32>
    %48 = vector.broadcast %47 : vector<1x1x1x4xf32> to vector<2x8x8x4xf32>
    %49 = arith.mulf %44, %48 : vector<2x8x8x4xf32>
    %50 = vector.extract_strided_slice %42 {offsets = [0, 0, 1, 0, 0], sizes = [2, 8, 1, 8, 4], strides = [1, 1, 1, 1, 1]} : vector<2x9x2x8x4xf32> to vector<2x8x1x8x4xf32>
    %51 = vector.shape_cast %50 : vector<2x8x1x8x4xf32> to vector<2x8x8x4xf32>
    %52 = vector.extract_strided_slice %2 {offsets = [1, 0, 0, 0], sizes = [1, 1, 1, 4], strides = [1, 1, 1, 1]} : vector<4x1x1x4xf32> to vector<1x1x1x4xf32>
    %53 = vector.shape_cast %52 : vector<1x1x1x4xf32> to vector<1x1x4xf32>
    %54 = vector.shape_cast %53 : vector<1x1x4xf32> to vector<1x1x1x4xf32>
    %55 = vector.broadcast %54 : vector<1x1x1x4xf32> to vector<2x8x8x4xf32>
    %56 = arith.mulf %51, %55 : vector<2x8x8x4xf32>
    %57 = arith.addf %49, %56 : vector<2x8x8x4xf32>
    %58 = vector.extract_strided_slice %42 {offsets = [0, 1, 0, 0, 0], sizes = [2, 8, 1, 8, 4], strides = [1, 1, 1, 1, 1]} : vector<2x9x2x8x4xf32> to vector<2x8x1x8x4xf32>
    %59 = vector.shape_cast %58 : vector<2x8x1x8x4xf32> to vector<2x8x8x4xf32>
    %60 = vector.extract_strided_slice %2 {offsets = [2, 0, 0, 0], sizes = [1, 1, 1, 4], strides = [1, 1, 1, 1]} : vector<4x1x1x4xf32> to vector<1x1x1x4xf32>
    %61 = vector.shape_cast %60 : vector<1x1x1x4xf32> to vector<1x1x4xf32>
    %62 = vector.shape_cast %61 : vector<1x1x4xf32> to vector<1x1x1x4xf32>
    %63 = vector.broadcast %62 : vector<1x1x1x4xf32> to vector<2x8x8x4xf32>
    %64 = arith.mulf %59, %63 : vector<2x8x8x4xf32>
    %65 = arith.addf %57, %64 : vector<2x8x8x4xf32>
    %66 = vector.extract_strided_slice %42 {offsets = [0, 1, 1, 0, 0], sizes = [2, 8, 1, 8, 4], strides = [1, 1, 1, 1, 1]} : vector<2x9x2x8x4xf32> to vector<2x8x1x8x4xf32>
    %67 = vector.shape_cast %66 : vector<2x8x1x8x4xf32> to vector<2x8x8x4xf32>
    %68 = vector.extract_strided_slice %2 {offsets = [3, 0, 0, 0], sizes = [1, 1, 1, 4], strides = [1, 1, 1, 1]} : vector<4x1x1x4xf32> to vector<1x1x1x4xf32>
    %69 = vector.shape_cast %68 : vector<1x1x1x4xf32> to vector<1x1x4xf32>
    %70 = vector.shape_cast %69 : vector<1x1x4xf32> to vector<1x1x1x4xf32>
    %71 = vector.broadcast %70 : vector<1x1x1x4xf32> to vector<2x8x8x4xf32>
    %72 = arith.mulf %67, %71 : vector<2x8x8x4xf32>
    %73 = arith.addf %65, %72 : vector<2x8x8x4xf32>
    %74 = vector.shape_cast %73 : vector<2x8x8x4xf32> to vector<128x4xf32>
    %cst_16 = arith.constant dense<0.000000e+00> : vector<128x16xf32>
    %75 = tpu.matmul %74, %3, %cst_16 {dimension_numbers = #tpu.dot_dimension_numbers<[1], [0], [0], [1], [0, 0, 1, 1], [], []>} : vector<128x4xf32>, vector<4x16xf32>, vector<128x16xf32> -> vector<128x16xf32>
    %76 = vector.broadcast %4 : vector<1x16xf32> to vector<128x16xf32>
    %77 = arith.addf %75, %76 : vector<128x16xf32>
    %cst_17 = arith.constant 0.000000e+00 : f32
    %78 = vector.broadcast %cst_17 : f32 to vector<128x16xf32>
    %79 = arith.maximumf %77, %78 : vector<128x16xf32>
    %80 = vector.shape_cast %79 : vector<128x16xf32> to vector<2x8x8x16xf32>
    %c0_18 = arith.constant 0 : index
    %c0_19 = arith.constant 0 : index
    %c0_20 = arith.constant 0 : index
    %c0_21 = arith.constant 0 : index
    %81 = vector.load %arg5[%c0_18, %c0_19, %c0_20, %c0_21] : memref<4x1x1x16xf32, #tpu.memory_space<vmem>>, vector<4x1x1x16xf32>
    %c0_22 = arith.constant 0 : index
    %c0_23 = arith.constant 0 : index
    %c0_24 = arith.constant 0 : index
    %c0_25 = arith.constant 0 : index
    %82 = vector.load %arg6[%c0_22, %c0_23, %c0_24, %c0_25] : memref<4x1x1x16xf32, #tpu.memory_space<vmem>>, vector<4x1x1x16xf32>
    %c0_26 = arith.constant 0 : index
    %c0_27 = arith.constant 0 : index
    %83 = vector.load %arg7[%c0_26, %c0_27] : memref<16x16xf32, #tpu.memory_space<vmem>>, vector<16x16xf32>
    %c0_28 = arith.constant 0 : index
    %c0_29 = arith.constant 0 : index
    %84 = vector.load %arg8[%c0_28, %c0_29] : memref<1x16xf32, #tpu.memory_space<vmem>>, vector<1x16xf32>
    %cst_30 = arith.constant 0.000000e+00 : f32
    %85 = vector.broadcast %cst_30 : f32 to vector<2x1x8x16xf32>
    %86 = tpu.concatenate %85, %80, %85 in 1 : vector<2x1x8x16xf32>, vector<2x8x8x16xf32>, vector<2x1x8x16xf32> -> vector<2x10x8x16xf32>
    %87 = vector.shape_cast %86 : vector<2x10x8x16xf32> to vector<2x5x2x8x16xf32>
    %88 = vector.extract_strided_slice %87 {offsets = [0, 0, 0, 0, 0], sizes = [2, 4, 1, 8, 16], strides = [1, 1, 1, 1, 1]} : vector<2x5x2x8x16xf32> to vector<2x4x1x8x16xf32>
    %89 = vector.shape_cast %88 : vector<2x4x1x8x16xf32> to vector<2x4x8x16xf32>
    %90 = vector.extract_strided_slice %82 {offsets = [0, 0, 0, 0], sizes = [1, 1, 1, 16], strides = [1, 1, 1, 1]} : vector<4x1x1x16xf32> to vector<1x1x1x16xf32>
    %91 = vector.shape_cast %90 : vector<1x1x1x16xf32> to vector<1x1x16xf32>
    %92 = vector.shape_cast %91 : vector<1x1x16xf32> to vector<1x1x1x16xf32>
    %93 = vector.broadcast %92 : vector<1x1x1x16xf32> to vector<2x4x8x16xf32>
    %94 = arith.mulf %89, %93 : vector<2x4x8x16xf32>
    %95 = vector.extract_strided_slice %87 {offsets = [0, 0, 1, 0, 0], sizes = [2, 4, 1, 8, 16], strides = [1, 1, 1, 1, 1]} : vector<2x5x2x8x16xf32> to vector<2x4x1x8x16xf32>
    %96 = vector.shape_cast %95 : vector<2x4x1x8x16xf32> to vector<2x4x8x16xf32>
    %97 = vector.extract_strided_slice %82 {offsets = [1, 0, 0, 0], sizes = [1, 1, 1, 16], strides = [1, 1, 1, 1]} : vector<4x1x1x16xf32> to vector<1x1x1x16xf32>
    %98 = vector.shape_cast %97 : vector<1x1x1x16xf32> to vector<1x1x16xf32>
    %99 = vector.shape_cast %98 : vector<1x1x16xf32> to vector<1x1x1x16xf32>
    %100 = vector.broadcast %99 : vector<1x1x1x16xf32> to vector<2x4x8x16xf32>
    %101 = arith.mulf %96, %100 : vector<2x4x8x16xf32>
    %102 = arith.addf %94, %101 : vector<2x4x8x16xf32>
    %103 = vector.extract_strided_slice %87 {offsets = [0, 1, 0, 0, 0], sizes = [2, 4, 1, 8, 16], strides = [1, 1, 1, 1, 1]} : vector<2x5x2x8x16xf32> to vector<2x4x1x8x16xf32>
    %104 = vector.shape_cast %103 : vector<2x4x1x8x16xf32> to vector<2x4x8x16xf32>
    %105 = vector.extract_strided_slice %82 {offsets = [2, 0, 0, 0], sizes = [1, 1, 1, 16], strides = [1, 1, 1, 1]} : vector<4x1x1x16xf32> to vector<1x1x1x16xf32>
    %106 = vector.shape_cast %105 : vector<1x1x1x16xf32> to vector<1x1x16xf32>
    %107 = vector.shape_cast %106 : vector<1x1x16xf32> to vector<1x1x1x16xf32>
    %108 = vector.broadcast %107 : vector<1x1x1x16xf32> to vector<2x4x8x16xf32>
    %109 = arith.mulf %104, %108 : vector<2x4x8x16xf32>
    %110 = arith.addf %102, %109 : vector<2x4x8x16xf32>
    %111 = vector.extract_strided_slice %87 {offsets = [0, 1, 1, 0, 0], sizes = [2, 4, 1, 8, 16], strides = [1, 1, 1, 1, 1]} : vector<2x5x2x8x16xf32> to vector<2x4x1x8x16xf32>
    %112 = vector.shape_cast %111 : vector<2x4x1x8x16xf32> to vector<2x4x8x16xf32>
    %113 = vector.extract_strided_slice %82 {offsets = [3, 0, 0, 0], sizes = [1, 1, 1, 16], strides = [1, 1, 1, 1]} : vector<4x1x1x16xf32> to vector<1x1x1x16xf32>
    %114 = vector.shape_cast %113 : vector<1x1x1x16xf32> to vector<1x1x16xf32>
    %115 = vector.shape_cast %114 : vector<1x1x16xf32> to vector<1x1x1x16xf32>
    %116 = vector.broadcast %115 : vector<1x1x1x16xf32> to vector<2x4x8x16xf32>
    %117 = arith.mulf %112, %116 : vector<2x4x8x16xf32>
    %118 = arith.addf %110, %117 : vector<2x4x8x16xf32>
    %119 = tpu.transpose %118, [0, 2, 1, 3] : vector<2x4x8x16xf32> -> vector<2x8x4x16xf32>
    %cst_31 = arith.constant 0.000000e+00 : f32
    %120 = vector.broadcast %cst_31 : f32 to vector<2x1x4x16xf32>
    %121 = tpu.concatenate %120, %119, %120 in 1 : vector<2x1x4x16xf32>, vector<2x8x4x16xf32>, vector<2x1x4x16xf32> -> vector<2x10x4x16xf32>
    %122 = vector.shape_cast %121 : vector<2x10x4x16xf32> to vector<2x5x2x4x16xf32>
    %123 = vector.extract_strided_slice %122 {offsets = [0, 0, 0, 0, 0], sizes = [2, 4, 1, 4, 16], strides = [1, 1, 1, 1, 1]} : vector<2x5x2x4x16xf32> to vector<2x4x1x4x16xf32>
    %124 = vector.shape_cast %123 : vector<2x4x1x4x16xf32> to vector<2x4x4x16xf32>
    %125 = vector.extract_strided_slice %81 {offsets = [0, 0, 0, 0], sizes = [1, 1, 1, 16], strides = [1, 1, 1, 1]} : vector<4x1x1x16xf32> to vector<1x1x1x16xf32>
    %126 = vector.shape_cast %125 : vector<1x1x1x16xf32> to vector<1x1x16xf32>
    %127 = vector.shape_cast %126 : vector<1x1x16xf32> to vector<1x1x1x16xf32>
    %128 = vector.broadcast %127 : vector<1x1x1x16xf32> to vector<2x4x4x16xf32>
    %129 = arith.mulf %124, %128 : vector<2x4x4x16xf32>
    %130 = vector.extract_strided_slice %122 {offsets = [0, 0, 1, 0, 0], sizes = [2, 4, 1, 4, 16], strides = [1, 1, 1, 1, 1]} : vector<2x5x2x4x16xf32> to vector<2x4x1x4x16xf32>
    %131 = vector.shape_cast %130 : vector<2x4x1x4x16xf32> to vector<2x4x4x16xf32>
    %132 = vector.extract_strided_slice %81 {offsets = [1, 0, 0, 0], sizes = [1, 1, 1, 16], strides = [1, 1, 1, 1]} : vector<4x1x1x16xf32> to vector<1x1x1x16xf32>
    %133 = vector.shape_cast %132 : vector<1x1x1x16xf32> to vector<1x1x16xf32>
    %134 = vector.shape_cast %133 : vector<1x1x16xf32> to vector<1x1x1x16xf32>
    %135 = vector.broadcast %134 : vector<1x1x1x16xf32> to vector<2x4x4x16xf32>
    %136 = arith.mulf %131, %135 : vector<2x4x4x16xf32>
    %137 = arith.addf %129, %136 : vector<2x4x4x16xf32>
    %138 = vector.extract_strided_slice %122 {offsets = [0, 1, 0, 0, 0], sizes = [2, 4, 1, 4, 16], strides = [1, 1, 1, 1, 1]} : vector<2x5x2x4x16xf32> to vector<2x4x1x4x16xf32>
    %139 = vector.shape_cast %138 : vector<2x4x1x4x16xf32> to vector<2x4x4x16xf32>
    %140 = vector.extract_strided_slice %81 {offsets = [2, 0, 0, 0], sizes = [1, 1, 1, 16], strides = [1, 1, 1, 1]} : vector<4x1x1x16xf32> to vector<1x1x1x16xf32>
    %141 = vector.shape_cast %140 : vector<1x1x1x16xf32> to vector<1x1x16xf32>
    %142 = vector.shape_cast %141 : vector<1x1x16xf32> to vector<1x1x1x16xf32>
    %143 = vector.broadcast %142 : vector<1x1x1x16xf32> to vector<2x4x4x16xf32>
    %144 = arith.mulf %139, %143 : vector<2x4x4x16xf32>
    %145 = arith.addf %137, %144 : vector<2x4x4x16xf32>
    %146 = vector.extract_strided_slice %122 {offsets = [0, 1, 1, 0, 0], sizes = [2, 4, 1, 4, 16], strides = [1, 1, 1, 1, 1]} : vector<2x5x2x4x16xf32> to vector<2x4x1x4x16xf32>
    %147 = vector.shape_cast %146 : vector<2x4x1x4x16xf32> to vector<2x4x4x16xf32>
    %148 = vector.extract_strided_slice %81 {offsets = [3, 0, 0, 0], sizes = [1, 1, 1, 16], strides = [1, 1, 1, 1]} : vector<4x1x1x16xf32> to vector<1x1x1x16xf32>
    %149 = vector.shape_cast %148 : vector<1x1x1x16xf32> to vector<1x1x16xf32>
    %150 = vector.shape_cast %149 : vector<1x1x16xf32> to vector<1x1x1x16xf32>
    %151 = vector.broadcast %150 : vector<1x1x1x16xf32> to vector<2x4x4x16xf32>
    %152 = arith.mulf %147, %151 : vector<2x4x4x16xf32>
    %153 = arith.addf %145, %152 : vector<2x4x4x16xf32>
    %154 = vector.shape_cast %153 : vector<2x4x4x16xf32> to vector<32x16xf32>
    %cst_32 = arith.constant dense<0.000000e+00> : vector<32x16xf32>
    %155 = tpu.matmul %154, %83, %cst_32 {dimension_numbers = #tpu.dot_dimension_numbers<[1], [0], [0], [1], [0, 0, 1, 1], [], []>} : vector<32x16xf32>, vector<16x16xf32>, vector<32x16xf32> -> vector<32x16xf32>
    %156 = vector.broadcast %84 : vector<1x16xf32> to vector<32x16xf32>
    %157 = arith.addf %155, %156 : vector<32x16xf32>
    %cst_33 = arith.constant 0.000000e+00 : f32
    %158 = vector.broadcast %cst_33 : f32 to vector<32x16xf32>
    %159 = arith.maximumf %157, %158 : vector<32x16xf32>
    %160 = vector.shape_cast %159 : vector<32x16xf32> to vector<2x4x4x16xf32>
    %c0_34 = arith.constant 0 : index
    %c0_35 = arith.constant 0 : index
    %c0_36 = arith.constant 0 : index
    %c0_37 = arith.constant 0 : index
    %161 = vector.load %arg9[%c0_34, %c0_35, %c0_36, %c0_37] : memref<4x1x1x16xf32, #tpu.memory_space<vmem>>, vector<4x1x1x16xf32>
    %c0_38 = arith.constant 0 : index
    %c0_39 = arith.constant 0 : index
    %c0_40 = arith.constant 0 : index
    %c0_41 = arith.constant 0 : index
    %162 = vector.load %arg10[%c0_38, %c0_39, %c0_40, %c0_41] : memref<4x1x1x16xf32, #tpu.memory_space<vmem>>, vector<4x1x1x16xf32>
    %c0_42 = arith.constant 0 : index
    %c0_43 = arith.constant 0 : index
    %163 = vector.load %arg11[%c0_42, %c0_43] : memref<16x16xf32, #tpu.memory_space<vmem>>, vector<16x16xf32>
    %c0_44 = arith.constant 0 : index
    %c0_45 = arith.constant 0 : index
    %164 = vector.load %arg12[%c0_44, %c0_45] : memref<1x16xf32, #tpu.memory_space<vmem>>, vector<1x16xf32>
    %cst_46 = arith.constant 0.000000e+00 : f32
    %165 = vector.broadcast %cst_46 : f32 to vector<2x1x4x16xf32>
    %166 = tpu.concatenate %165, %160, %165 in 1 : vector<2x1x4x16xf32>, vector<2x4x4x16xf32>, vector<2x1x4x16xf32> -> vector<2x6x4x16xf32>
    %167 = vector.shape_cast %166 : vector<2x6x4x16xf32> to vector<2x3x2x4x16xf32>
    %168 = vector.extract_strided_slice %167 {offsets = [0, 0, 0, 0, 0], sizes = [2, 2, 1, 4, 16], strides = [1, 1, 1, 1, 1]} : vector<2x3x2x4x16xf32> to vector<2x2x1x4x16xf32>
    %169 = vector.shape_cast %168 : vector<2x2x1x4x16xf32> to vector<2x2x4x16xf32>
    %170 = vector.extract_strided_slice %161 {offsets = [0, 0, 0, 0], sizes = [1, 1, 1, 16], strides = [1, 1, 1, 1]} : vector<4x1x1x16xf32> to vector<1x1x1x16xf32>
    %171 = vector.shape_cast %170 : vector<1x1x1x16xf32> to vector<1x1x16xf32>
    %172 = vector.shape_cast %171 : vector<1x1x16xf32> to vector<1x1x1x16xf32>
    %173 = vector.broadcast %172 : vector<1x1x1x16xf32> to vector<2x2x4x16xf32>
    %174 = arith.mulf %169, %173 : vector<2x2x4x16xf32>
    %175 = vector.extract_strided_slice %167 {offsets = [0, 0, 1, 0, 0], sizes = [2, 2, 1, 4, 16], strides = [1, 1, 1, 1, 1]} : vector<2x3x2x4x16xf32> to vector<2x2x1x4x16xf32>
    %176 = vector.shape_cast %175 : vector<2x2x1x4x16xf32> to vector<2x2x4x16xf32>
    %177 = vector.extract_strided_slice %161 {offsets = [1, 0, 0, 0], sizes = [1, 1, 1, 16], strides = [1, 1, 1, 1]} : vector<4x1x1x16xf32> to vector<1x1x1x16xf32>
    %178 = vector.shape_cast %177 : vector<1x1x1x16xf32> to vector<1x1x16xf32>
    %179 = vector.shape_cast %178 : vector<1x1x16xf32> to vector<1x1x1x16xf32>
    %180 = vector.broadcast %179 : vector<1x1x1x16xf32> to vector<2x2x4x16xf32>
    %181 = arith.mulf %176, %180 : vector<2x2x4x16xf32>
    %182 = arith.addf %174, %181 : vector<2x2x4x16xf32>
    %183 = vector.extract_strided_slice %167 {offsets = [0, 1, 0, 0, 0], sizes = [2, 2, 1, 4, 16], strides = [1, 1, 1, 1, 1]} : vector<2x3x2x4x16xf32> to vector<2x2x1x4x16xf32>
    %184 = vector.shape_cast %183 : vector<2x2x1x4x16xf32> to vector<2x2x4x16xf32>
    %185 = vector.extract_strided_slice %161 {offsets = [2, 0, 0, 0], sizes = [1, 1, 1, 16], strides = [1, 1, 1, 1]} : vector<4x1x1x16xf32> to vector<1x1x1x16xf32>
    %186 = vector.shape_cast %185 : vector<1x1x1x16xf32> to vector<1x1x16xf32>
    %187 = vector.shape_cast %186 : vector<1x1x16xf32> to vector<1x1x1x16xf32>
    %188 = vector.broadcast %187 : vector<1x1x1x16xf32> to vector<2x2x4x16xf32>
    %189 = arith.mulf %184, %188 : vector<2x2x4x16xf32>
    %190 = arith.addf %182, %189 : vector<2x2x4x16xf32>
    %191 = vector.extract_strided_slice %167 {offsets = [0, 1, 1, 0, 0], sizes = [2, 2, 1, 4, 16], strides = [1, 1, 1, 1, 1]} : vector<2x3x2x4x16xf32> to vector<2x2x1x4x16xf32>
    %192 = vector.shape_cast %191 : vector<2x2x1x4x16xf32> to vector<2x2x4x16xf32>
    %193 = vector.extract_strided_slice %161 {offsets = [3, 0, 0, 0], sizes = [1, 1, 1, 16], strides = [1, 1, 1, 1]} : vector<4x1x1x16xf32> to vector<1x1x1x16xf32>
    %194 = vector.shape_cast %193 : vector<1x1x1x16xf32> to vector<1x1x16xf32>
    %195 = vector.shape_cast %194 : vector<1x1x16xf32> to vector<1x1x1x16xf32>
    %196 = vector.broadcast %195 : vector<1x1x1x16xf32> to vector<2x2x4x16xf32>
    %197 = arith.mulf %192, %196 : vector<2x2x4x16xf32>
    %198 = arith.addf %190, %197 : vector<2x2x4x16xf32>
    %199 = tpu.transpose %198, [0, 2, 1, 3] : vector<2x2x4x16xf32> -> vector<2x4x2x16xf32>
    %cst_47 = arith.constant 0.000000e+00 : f32
    %200 = vector.broadcast %cst_47 : f32 to vector<2x1x2x16xf32>
    %201 = tpu.concatenate %200, %199, %200 in 1 : vector<2x1x2x16xf32>, vector<2x4x2x16xf32>, vector<2x1x2x16xf32> -> vector<2x6x2x16xf32>
    %202 = vector.shape_cast %201 : vector<2x6x2x16xf32> to vector<2x3x2x2x16xf32>
    %203 = vector.extract_strided_slice %202 {offsets = [0, 0, 0, 0, 0], sizes = [2, 2, 1, 2, 16], strides = [1, 1, 1, 1, 1]} : vector<2x3x2x2x16xf32> to vector<2x2x1x2x16xf32>
    %204 = vector.shape_cast %203 : vector<2x2x1x2x16xf32> to vector<2x2x2x16xf32>
    %205 = vector.extract_strided_slice %162 {offsets = [0, 0, 0, 0], sizes = [1, 1, 1, 16], strides = [1, 1, 1, 1]} : vector<4x1x1x16xf32> to vector<1x1x1x16xf32>
    %206 = vector.shape_cast %205 : vector<1x1x1x16xf32> to vector<1x1x16xf32>
    %207 = vector.shape_cast %206 : vector<1x1x16xf32> to vector<1x1x1x16xf32>
    %208 = vector.broadcast %207 : vector<1x1x1x16xf32> to vector<2x2x2x16xf32>
    %209 = arith.mulf %204, %208 : vector<2x2x2x16xf32>
    %210 = vector.extract_strided_slice %202 {offsets = [0, 0, 1, 0, 0], sizes = [2, 2, 1, 2, 16], strides = [1, 1, 1, 1, 1]} : vector<2x3x2x2x16xf32> to vector<2x2x1x2x16xf32>
    %211 = vector.shape_cast %210 : vector<2x2x1x2x16xf32> to vector<2x2x2x16xf32>
    %212 = vector.extract_strided_slice %162 {offsets = [1, 0, 0, 0], sizes = [1, 1, 1, 16], strides = [1, 1, 1, 1]} : vector<4x1x1x16xf32> to vector<1x1x1x16xf32>
    %213 = vector.shape_cast %212 : vector<1x1x1x16xf32> to vector<1x1x16xf32>
    %214 = vector.shape_cast %213 : vector<1x1x16xf32> to vector<1x1x1x16xf32>
    %215 = vector.broadcast %214 : vector<1x1x1x16xf32> to vector<2x2x2x16xf32>
    %216 = arith.mulf %211, %215 : vector<2x2x2x16xf32>
    %217 = arith.addf %209, %216 : vector<2x2x2x16xf32>
    %218 = vector.extract_strided_slice %202 {offsets = [0, 1, 0, 0, 0], sizes = [2, 2, 1, 2, 16], strides = [1, 1, 1, 1, 1]} : vector<2x3x2x2x16xf32> to vector<2x2x1x2x16xf32>
    %219 = vector.shape_cast %218 : vector<2x2x1x2x16xf32> to vector<2x2x2x16xf32>
    %220 = vector.extract_strided_slice %162 {offsets = [2, 0, 0, 0], sizes = [1, 1, 1, 16], strides = [1, 1, 1, 1]} : vector<4x1x1x16xf32> to vector<1x1x1x16xf32>
    %221 = vector.shape_cast %220 : vector<1x1x1x16xf32> to vector<1x1x16xf32>
    %222 = vector.shape_cast %221 : vector<1x1x16xf32> to vector<1x1x1x16xf32>
    %223 = vector.broadcast %222 : vector<1x1x1x16xf32> to vector<2x2x2x16xf32>
    %224 = arith.mulf %219, %223 : vector<2x2x2x16xf32>
    %225 = arith.addf %217, %224 : vector<2x2x2x16xf32>
    %226 = vector.extract_strided_slice %202 {offsets = [0, 1, 1, 0, 0], sizes = [2, 2, 1, 2, 16], strides = [1, 1, 1, 1, 1]} : vector<2x3x2x2x16xf32> to vector<2x2x1x2x16xf32>
    %227 = vector.shape_cast %226 : vector<2x2x1x2x16xf32> to vector<2x2x2x16xf32>
    %228 = vector.extract_strided_slice %162 {offsets = [3, 0, 0, 0], sizes = [1, 1, 1, 16], strides = [1, 1, 1, 1]} : vector<4x1x1x16xf32> to vector<1x1x1x16xf32>
    %229 = vector.shape_cast %228 : vector<1x1x1x16xf32> to vector<1x1x16xf32>
    %230 = vector.shape_cast %229 : vector<1x1x16xf32> to vector<1x1x1x16xf32>
    %231 = vector.broadcast %230 : vector<1x1x1x16xf32> to vector<2x2x2x16xf32>
    %232 = arith.mulf %227, %231 : vector<2x2x2x16xf32>
    %233 = arith.addf %225, %232 : vector<2x2x2x16xf32>
    %234 = vector.shape_cast %233 : vector<2x2x2x16xf32> to vector<8x16xf32>
    %cst_48 = arith.constant dense<0.000000e+00> : vector<8x16xf32>
    %235 = tpu.matmul %234, %163, %cst_48 {dimension_numbers = #tpu.dot_dimension_numbers<[1], [0], [0], [1], [0, 0, 1, 1], [], []>} : vector<8x16xf32>, vector<16x16xf32>, vector<8x16xf32> -> vector<8x16xf32>
    %236 = vector.broadcast %164 : vector<1x16xf32> to vector<8x16xf32>
    %237 = arith.addf %235, %236 : vector<8x16xf32>
    %cst_49 = arith.constant 0.000000e+00 : f32
    %238 = vector.broadcast %cst_49 : f32 to vector<8x16xf32>
    %239 = arith.maximumf %237, %238 : vector<8x16xf32>
    %240 = vector.shape_cast %239 : vector<8x16xf32> to vector<2x2x2x16xf32>
    %c0_50 = arith.constant 0 : index
    %c0_51 = arith.constant 0 : index
    %c0_52 = arith.constant 0 : index
    %c0_53 = arith.constant 0 : index
    %241 = vector.load %arg13[%c0_50, %c0_51, %c0_52, %c0_53] : memref<4x1x1x16xf32, #tpu.memory_space<vmem>>, vector<4x1x1x16xf32>
    %c0_54 = arith.constant 0 : index
    %c0_55 = arith.constant 0 : index
    %c0_56 = arith.constant 0 : index
    %c0_57 = arith.constant 0 : index
    %242 = vector.load %arg14[%c0_54, %c0_55, %c0_56, %c0_57] : memref<4x1x1x16xf32, #tpu.memory_space<vmem>>, vector<4x1x1x16xf32>
    %c0_58 = arith.constant 0 : index
    %c0_59 = arith.constant 0 : index
    %243 = vector.load %arg15[%c0_58, %c0_59] : memref<16x16xf32, #tpu.memory_space<vmem>>, vector<16x16xf32>
    %c0_60 = arith.constant 0 : index
    %c0_61 = arith.constant 0 : index
    %244 = vector.load %arg16[%c0_60, %c0_61] : memref<1x16xf32, #tpu.memory_space<vmem>>, vector<1x16xf32>
    %cst_62 = arith.constant 0.000000e+00 : f32
    %245 = vector.broadcast %cst_62 : f32 to vector<2x1x2x16xf32>
    %246 = tpu.concatenate %245, %240, %245 in 1 : vector<2x1x2x16xf32>, vector<2x2x2x16xf32>, vector<2x1x2x16xf32> -> vector<2x4x2x16xf32>
    %247 = vector.shape_cast %246 : vector<2x4x2x16xf32> to vector<2x2x2x2x16xf32>
    %248 = vector.extract_strided_slice %247 {offsets = [0, 0, 0, 0, 0], sizes = [2, 1, 1, 2, 16], strides = [1, 1, 1, 1, 1]} : vector<2x2x2x2x16xf32> to vector<2x1x1x2x16xf32>
    %249 = vector.shape_cast %248 : vector<2x1x1x2x16xf32> to vector<2x1x2x16xf32>
    %250 = vector.extract_strided_slice %242 {offsets = [0, 0, 0, 0], sizes = [1, 1, 1, 16], strides = [1, 1, 1, 1]} : vector<4x1x1x16xf32> to vector<1x1x1x16xf32>
    %251 = vector.shape_cast %250 : vector<1x1x1x16xf32> to vector<1x1x16xf32>
    %252 = vector.shape_cast %251 : vector<1x1x16xf32> to vector<1x1x1x16xf32>
    %253 = vector.broadcast %252 : vector<1x1x1x16xf32> to vector<2x1x2x16xf32>
    %254 = arith.mulf %249, %253 : vector<2x1x2x16xf32>
    %255 = vector.extract_strided_slice %247 {offsets = [0, 0, 1, 0, 0], sizes = [2, 1, 1, 2, 16], strides = [1, 1, 1, 1, 1]} : vector<2x2x2x2x16xf32> to vector<2x1x1x2x16xf32>
    %256 = vector.shape_cast %255 : vector<2x1x1x2x16xf32> to vector<2x1x2x16xf32>
    %257 = vector.extract_strided_slice %242 {offsets = [1, 0, 0, 0], sizes = [1, 1, 1, 16], strides = [1, 1, 1, 1]} : vector<4x1x1x16xf32> to vector<1x1x1x16xf32>
    %258 = vector.shape_cast %257 : vector<1x1x1x16xf32> to vector<1x1x16xf32>
    %259 = vector.shape_cast %258 : vector<1x1x16xf32> to vector<1x1x1x16xf32>
    %260 = vector.broadcast %259 : vector<1x1x1x16xf32> to vector<2x1x2x16xf32>
    %261 = arith.mulf %256, %260 : vector<2x1x2x16xf32>
    %262 = arith.addf %254, %261 : vector<2x1x2x16xf32>
    %263 = vector.extract_strided_slice %247 {offsets = [0, 1, 0, 0, 0], sizes = [2, 1, 1, 2, 16], strides = [1, 1, 1, 1, 1]} : vector<2x2x2x2x16xf32> to vector<2x1x1x2x16xf32>
    %264 = vector.shape_cast %263 : vector<2x1x1x2x16xf32> to vector<2x1x2x16xf32>
    %265 = vector.extract_strided_slice %242 {offsets = [2, 0, 0, 0], sizes = [1, 1, 1, 16], strides = [1, 1, 1, 1]} : vector<4x1x1x16xf32> to vector<1x1x1x16xf32>
    %266 = vector.shape_cast %265 : vector<1x1x1x16xf32> to vector<1x1x16xf32>
    %267 = vector.shape_cast %266 : vector<1x1x16xf32> to vector<1x1x1x16xf32>
    %268 = vector.broadcast %267 : vector<1x1x1x16xf32> to vector<2x1x2x16xf32>
    %269 = arith.mulf %264, %268 : vector<2x1x2x16xf32>
    %270 = arith.addf %262, %269 : vector<2x1x2x16xf32>
    %271 = vector.extract_strided_slice %247 {offsets = [0, 1, 1, 0, 0], sizes = [2, 1, 1, 2, 16], strides = [1, 1, 1, 1, 1]} : vector<2x2x2x2x16xf32> to vector<2x1x1x2x16xf32>
    %272 = vector.shape_cast %271 : vector<2x1x1x2x16xf32> to vector<2x1x2x16xf32>
    %273 = vector.extract_strided_slice %242 {offsets = [3, 0, 0, 0], sizes = [1, 1, 1, 16], strides = [1, 1, 1, 1]} : vector<4x1x1x16xf32> to vector<1x1x1x16xf32>
    %274 = vector.shape_cast %273 : vector<1x1x1x16xf32> to vector<1x1x16xf32>
    %275 = vector.shape_cast %274 : vector<1x1x16xf32> to vector<1x1x1x16xf32>
    %276 = vector.broadcast %275 : vector<1x1x1x16xf32> to vector<2x1x2x16xf32>
    %277 = arith.mulf %272, %276 : vector<2x1x2x16xf32>
    %278 = arith.addf %270, %277 : vector<2x1x2x16xf32>
    %279 = tpu.transpose %278, [0, 2, 1, 3] : vector<2x1x2x16xf32> -> vector<2x2x1x16xf32>
    %cst_63 = arith.constant 0.000000e+00 : f32
    %280 = vector.broadcast %cst_63 : f32 to vector<2x1x1x16xf32>
    %281 = tpu.concatenate %280, %279, %280 in 1 : vector<2x1x1x16xf32>, vector<2x2x1x16xf32>, vector<2x1x1x16xf32> -> vector<2x4x1x16xf32>
    %282 = vector.shape_cast %281 : vector<2x4x1x16xf32> to vector<2x2x2x1x16xf32>
    %283 = vector.extract_strided_slice %282 {offsets = [0, 0, 0, 0, 0], sizes = [2, 1, 1, 1, 16], strides = [1, 1, 1, 1, 1]} : vector<2x2x2x1x16xf32> to vector<2x1x1x1x16xf32>
    %284 = vector.shape_cast %283 : vector<2x1x1x1x16xf32> to vector<2x1x1x16xf32>
    %285 = vector.extract_strided_slice %241 {offsets = [0, 0, 0, 0], sizes = [1, 1, 1, 16], strides = [1, 1, 1, 1]} : vector<4x1x1x16xf32> to vector<1x1x1x16xf32>
    %286 = vector.shape_cast %285 : vector<1x1x1x16xf32> to vector<1x1x16xf32>
    %287 = vector.shape_cast %286 : vector<1x1x16xf32> to vector<1x1x1x16xf32>
    %288 = vector.broadcast %287 : vector<1x1x1x16xf32> to vector<2x1x1x16xf32>
    %289 = arith.mulf %284, %288 : vector<2x1x1x16xf32>
    %290 = vector.extract_strided_slice %282 {offsets = [0, 0, 1, 0, 0], sizes = [2, 1, 1, 1, 16], strides = [1, 1, 1, 1, 1]} : vector<2x2x2x1x16xf32> to vector<2x1x1x1x16xf32>
    %291 = vector.shape_cast %290 : vector<2x1x1x1x16xf32> to vector<2x1x1x16xf32>
    %292 = vector.extract_strided_slice %241 {offsets = [1, 0, 0, 0], sizes = [1, 1, 1, 16], strides = [1, 1, 1, 1]} : vector<4x1x1x16xf32> to vector<1x1x1x16xf32>
    %293 = vector.shape_cast %292 : vector<1x1x1x16xf32> to vector<1x1x16xf32>
    %294 = vector.shape_cast %293 : vector<1x1x16xf32> to vector<1x1x1x16xf32>
    %295 = vector.broadcast %294 : vector<1x1x1x16xf32> to vector<2x1x1x16xf32>
    %296 = arith.mulf %291, %295 : vector<2x1x1x16xf32>
    %297 = arith.addf %289, %296 : vector<2x1x1x16xf32>
    %298 = vector.extract_strided_slice %282 {offsets = [0, 1, 0, 0, 0], sizes = [2, 1, 1, 1, 16], strides = [1, 1, 1, 1, 1]} : vector<2x2x2x1x16xf32> to vector<2x1x1x1x16xf32>
    %299 = vector.shape_cast %298 : vector<2x1x1x1x16xf32> to vector<2x1x1x16xf32>
    %300 = vector.extract_strided_slice %241 {offsets = [2, 0, 0, 0], sizes = [1, 1, 1, 16], strides = [1, 1, 1, 1]} : vector<4x1x1x16xf32> to vector<1x1x1x16xf32>
    %301 = vector.shape_cast %300 : vector<1x1x1x16xf32> to vector<1x1x16xf32>
    %302 = vector.shape_cast %301 : vector<1x1x16xf32> to vector<1x1x1x16xf32>
    %303 = vector.broadcast %302 : vector<1x1x1x16xf32> to vector<2x1x1x16xf32>
    %304 = arith.mulf %299, %303 : vector<2x1x1x16xf32>
    %305 = arith.addf %297, %304 : vector<2x1x1x16xf32>
    %306 = vector.extract_strided_slice %282 {offsets = [0, 1, 1, 0, 0], sizes = [2, 1, 1, 1, 16], strides = [1, 1, 1, 1, 1]} : vector<2x2x2x1x16xf32> to vector<2x1x1x1x16xf32>
    %307 = vector.shape_cast %306 : vector<2x1x1x1x16xf32> to vector<2x1x1x16xf32>
    %308 = vector.extract_strided_slice %241 {offsets = [3, 0, 0, 0], sizes = [1, 1, 1, 16], strides = [1, 1, 1, 1]} : vector<4x1x1x16xf32> to vector<1x1x1x16xf32>
    %309 = vector.shape_cast %308 : vector<1x1x1x16xf32> to vector<1x1x16xf32>
    %310 = vector.shape_cast %309 : vector<1x1x16xf32> to vector<1x1x1x16xf32>
    %311 = vector.broadcast %310 : vector<1x1x1x16xf32> to vector<2x1x1x16xf32>
    %312 = arith.mulf %307, %311 : vector<2x1x1x16xf32>
    %313 = arith.addf %305, %312 : vector<2x1x1x16xf32>
    %314 = vector.shape_cast %313 : vector<2x1x1x16xf32> to vector<2x16xf32>
    %cst_64 = arith.constant dense<0.000000e+00> : vector<2x16xf32>
    %315 = tpu.matmul %314, %243, %cst_64 {dimension_numbers = #tpu.dot_dimension_numbers<[1], [0], [0], [1], [0, 0, 1, 1], [], []>} : vector<2x16xf32>, vector<16x16xf32>, vector<2x16xf32> -> vector<2x16xf32>
    %316 = vector.broadcast %244 : vector<1x16xf32> to vector<2x16xf32>
    %317 = arith.addf %315, %316 : vector<2x16xf32>
    %cst_65 = arith.constant 0.000000e+00 : f32
    %318 = vector.broadcast %cst_65 : f32 to vector<2x16xf32>
    %319 = arith.maximumf %317, %318 : vector<2x16xf32>
    %320 = vector.shape_cast %319 : vector<2x16xf32> to vector<2x1x1x16xf32>
    %c0_66 = arith.constant 0 : index
    %c0_67 = arith.constant 0 : index
    %c0_68 = arith.constant 0 : index
    %c0_69 = arith.constant 0 : index
    %321 = vector.load %arg17[%c0_66, %c0_67, %c0_68, %c0_69] : memref<2x1x1x16xf32, #tpu.memory_space<vmem>>, vector<2x1x1x16xf32>
    tpu.vector_store %arg17[%c0_66, %c0_67, %c0_68, %c0_69], %320 {strides = array<i32>} : memref<2x1x1x16xf32, #tpu.memory_space<vmem>>, vector<2x1x1x16xf32>,
    return
  }
}

</mosaic_0001>

<bundles_post_ra>
// kernel: freq_time_pooled_extractor.1
= control target key start
LH: loop header
LB: loop body
LE: loop exit
PB: predicated region body
PF: predicated region fallthrough
CT: control target
= control target key end

     0   :  { %s3545_s0 = inlined_call_operand.vmem [shape: f32[2,16,16,4], index: 0, kind: input, shape index: {}]   ;;  %s3546_s1 = inlined_call_operand.vmem [shape: f32[4,1,1,4], index: 1, kind: input, shape index: {}]   ;;  %s3547_s2 = inlined_call_operand.vmem [shape: f32[4,1,1,4], index: 2, kind: input, shape index: {}]   ;;  %s3548_s3 = inlined_call_operand.vmem [shape: f32[4,16], index: 3, kind: input, shape index: {}]   ;;  %s3549_s4 = inlined_call_operand.vmem [shape: f32[1,16], index: 4, kind: input, shape index: {}]   ;;  %s3550_s5 = inlined_call_operand.vmem [shape: f32[4,1,1,16], index: 5, kind: input, shape index: {}]   ;;  %s3551_s6 = inlined_call_operand.vmem [shape: f32[4,1,1,16], index: 6, kind: input, shape index: {}]   ;;  %s3552_s7 = inlined_call_operand.vmem [shape: f32[16,16], index: 7, kind: input, shape index: {}]   ;;  %s3553_s8 = inlined_call_operand.vmem [shape: f32[1,16], index: 8, kind: input, shape index: {}]   ;;  %s3554_s9 = inlined_call_operand.vmem [shape: f32[4,1,1,16], index: 9, kind: input, shape index: {}]   ;;  %s3555_s10 = inlined_call_operand.vmem [shape: f32[4,1,1,16], index: 10, kind: input, shape index: {}]   ;;  %s3556_s11 = inlined_call_operand.vmem [shape: f32[16,16], index: 11, kind: input, shape index: {}]   ;;  %s3557_s12 = inlined_call_operand.vmem [shape: f32[1,16], index: 12, kind: input, shape index: {}]   ;;  %s3558_s13 = inlined_call_operand.vmem [shape: f32[4,1,1,16], index: 13, kind: input, shape index: {}]   ;;  %s3559_s14 = inlined_call_operand.vmem [shape: f32[4,1,1,16], index: 14, kind: input, shape index: {}]   ;;  %s3560_s15 = inlined_call_operand.vmem [shape: f32[16,16], index: 15, kind: input, shape index: {}]   ;;  %s3561_s16 = inlined_call_operand.vmem [shape: f32[1,16], index: 16, kind: input, shape index: {}]   ;;  %s3562_s17 = inlined_call_operand.hbm [shape: f32[2,1,1,16], index: 17, kind: output, shape index: {}]  }
   0x1   :  { %3601 = sst [smem:[#allocation22_spill]] %s3545_s0 }
   0x2   :  { %3602 = sst [smem:[#allocation23_spill]] %s3546_s1 }
   0x3   :  { %v129_v0 = vld [vmem:[%s3548_s3] sm:$0xf]  ;;  %vm1106_vm0 = vcmask 1043456   ;;  %v2368_v1 = vmov 1983009808   ;;  %v378_v3 = vlaneseq  ;;  %s3603_s28 = sld [smem:[#allocation22_spill]] }
   0x4   :  { %2286 = vmatprep.subr.msk.mxu0 %vm1106_vm0, %v129_v0  ;;  %2336 = vmatprep.subr.msk.mxu1 %vm1106_vm0, %v129_v0  ;;  %v376_v2 = vunpack.c.l.s4 %v2368_v1  ;;  %v2369_v4 = vmov 1934713408   ;;  %s3606_s0 = sld [smem:[#allocation23_spill]] }
   0x5   :  { %2287 = vmatpush3.msk.msra.mxu0 %vm1106_vm0, %v129_v0  ;;  %2337 = vmatpush3.msk.msra.mxu1 %vm1106_vm0, %v129_v0  ;;  %v440_v5 = vunpack.c.l.s4 %v2369_v4  ;;  %v2474_v8 = vshrl.u32 %v378_v3, 7 }
   0x6   :  { %v377_v7 = vunpack.c.0.s8 %v376_v2 }
   0x7   :  { %3604 = vst [vmem:[#allocation5_spill] sm:$0xff] %v2474_v8  ;;  %v441_v9 = vunpack.c.0.s8 %v440_v5 }
   0x8   :  { %v2555_v26 = vsub.s32 %v377_v7, %v2474_v8 }
   0x9   :  { %v2472_v6 = vld [vmem:[%s3603_s28 + $0x10] sm:$0xff]  ;;  %v57_v16 = vld [vmem:[%s3603_s28] sm:$0xff]  ;;  %v2558_v27 = vsub.s32 %v441_v9, %v2474_v8 }
   0xa   :  { %v2479_v10 = vld [vmem:[%s3603_s28 + $0x30] sm:$0xff]  ;;  %v2527_v20 = vld [vmem:[%s3603_s28 + $0x20] sm:$0xff]  ;;  %3608 = vst [vmem:[#allocation8_spill] sm:$0xff] %v2555_v26 }
   0xb   :  { %v2484_v11 = vld [vmem:[%s3603_s28 + $0x50] sm:$0xff]  ;;  %v2532_v21 = vld [vmem:[%s3603_s28 + $0x40] sm:$0xff]  ;;  %3609 = vst [vmem:[#allocation9_spill] sm:$0xff] %v2558_v27 }
   0xc   :  { %v2489_v12 = vld [vmem:[%s3603_s28 + $0x70] sm:$0xff]  ;;  %v2537_v22 = vld [vmem:[%s3603_s28 + $0x60] sm:$0xff] }
   0xd   :  { %v2494_v13 = vld [vmem:[%s3603_s28 + $0x90] sm:$0xff]  ;;  %3605 = vst [vmem:[#allocation6_spill] sm:$0xff] %v2537_v22  ;;  %v2552_v25 = vld [vmem:[%s3606_s0] ss:$0 sm:$0xff]  ;;  %v2573_v30 = vld [vmem:[%s3606_s0 + $0x1] ss:$0 sm:$0xff] }
   0xe   :  { %v2499_v14 = vld [vmem:[%s3603_s28 + $0xb0] sm:$0xff]  ;;  %3607 = vst [vmem:[#allocation7_spill] sm:$0xff] %v2552_v25  ;;  %3610 = vst [vmem:[#allocation10_spill] sm:$0xff] %v2573_v30  ;;  %v138_v31 = vmul.f32 %v2552_v25, %v2472_v6  ;;  %v140_v32 = vmul.f32 %v2552_v25, %v2479_v10  ;;  %v142_v33 = vmul.f32 %v2552_v25, %v2484_v11  ;;  %v2586_v35 = vld [vmem:[%s3603_s28 + $0x80] sm:$0xff]  ;;  %v2599_v38 = vmul.f32 0.0, %v2552_v25 }
   0xf   :  { %v2504_v15 = vld [vmem:[%s3603_s28 + $0xd0] sm:$0xff]  ;;  %v144_v34 = vmul.f32 %v2552_v25, %v2489_v12  ;;  %3611 = vst [vmem:[#allocation11_spill] sm:$0xff] %v2586_v35  ;;  %v2591_v36 = vld [vmem:[%s3603_s28 + $0xa0] sm:$0xff]  ;;  %v146_v39 = vmul.f32 %v2552_v25, %v2494_v13  ;;  %v148_v40 = vmul.f32 %v2552_v25, %v2499_v14  ;;  %v172_v55 = vmul.f32 %v2573_v30, %v57_v16 }
  0x10   :  { %v2512_v17 = vld [vmem:[%s3603_s28 + $0x110] sm:$0xff]  ;;  %3612 = vst [vmem:[#allocation12_spill] sm:$0xff] %v2591_v36  ;;  %v2596_v37 = vld [vmem:[%s3603_s28 + $0xc0] sm:$0xff]  ;;  %v150_v41 = vmul.f32 %v2552_v25, %v2504_v15  ;;  %v174_v59 = vmul.f32 %v2573_v30, %v2527_v20  ;;  %v176_v60 = vmul.f32 %v2573_v30, %v2532_v21  ;;  %v178_v61 = vmul.f32 %v2573_v30, %v2537_v22 }
  0x11   :  { %v2517_v18 = vld [vmem:[%s3603_s28 + $0x130] sm:$0xff]  ;;  %3613 = vst [vmem:[#allocation13_spill] sm:$0xff] %v2596_v37  ;;  %v2610_v42 = vld [vmem:[%s3603_s28 + $0xe0] sm:$0xff]  ;;  %v152_v45 = vmul.f32 %v2552_v25, %v2512_v17  ;;  %v180_v62 = vmul.f32 %v2573_v30, %v2586_v35  ;;  %v182_v63 = vmul.f32 %v2573_v30, %v2591_v36  ;;  %v184_v0 = vmul.f32 %v2573_v30, %v2596_v37 }
  0x12   :  { %v2522_v19 = vld [vmem:[%s3603_s28 + $0x150] sm:$0xff]  ;;  %3614 = vst [vmem:[#allocation14_spill] sm:$0xff] %v2610_v42  ;;  %v89_v43 = vld [vmem:[%s3603_s28 + $0x100] sm:$0xff]  ;;  %v154_v46 = vmul.f32 %v2552_v25, %v2517_v18  ;;  %v186_v1 = vmul.f32 %v2573_v30, %v2610_v42  ;;  %v204_v8 = vadd.f32 %v172_v55, %v2599_v38  ;;  %v206_v27 = vadd.f32 %v174_v59, %v138_v31 }
  0x13   :  { %v2542_v23 = vld [vmem:[%s3603_s28 + $0x170] sm:$0xff]  ;;  %v2618_v44 = vld [vmem:[%s3603_s28 + $0x120] sm:$0xff]  ;;  %v156_v47 = vmul.f32 %v2552_v25, %v2522_v19  ;;  %v188_v2 = vmul.f32 %v2573_v30, %v89_v43  ;;  %v208_v26 = vadd.f32 %v176_v60, %v140_v32 }
  0x14   :  { %v2547_v24 = vld [vmem:[%s3603_s28 + $0x190] sm:$0xff]  ;;  %3615 = vst [vmem:[#allocation15_spill] sm:$0xff] %v2618_v44  ;;  %v158_v48 = vmul.f32 %v2552_v25, %v2542_v23  ;;  %v2631_v49 = vld [vmem:[%s3603_s28 + $0x140] sm:$0xff]  ;;  %v190_v3 = vmul.f32 %v2573_v30, %v2618_v44  ;;  %v216_v44 = vadd.f32 %v184_v0, %v148_v40 }
  0x15   :  { %v2563_v28 = vld [vmem:[%s3603_s28 + $0x1b0] sm:$0xff]  ;;  %3616 = vst [vmem:[#allocation16_spill] sm:$0xff] %v2631_v49  ;;  %v2636_v50 = vld [vmem:[%s3603_s28 + $0x160] sm:$0xff]  ;;  %v160_v52 = vmul.f32 %v2552_v25, %v2547_v24  ;;  %v192_v4 = vmul.f32 %v2573_v30, %v2631_v49  ;;  %v214_v49 = vadd.f32 %v182_v63, %v146_v39  ;;  %v220_v42 = vadd.f32 %v188_v2, %v2599_v38 }
  0x16   :  { %v2568_v29 = vld [vmem:[%s3603_s28 + $0x1d0] sm:$0xff]  ;;  %3617 = vst [vmem:[#allocation17_spill] sm:$0xff] %v2636_v50  ;;  %v2641_v51 = vld [vmem:[%s3603_s28 + $0x180] sm:$0xff]  ;;  %v162_v53 = vmul.f32 %v2552_v25, %v2563_v28  ;;  %v194_v5 = vmul.f32 %v2573_v30, %v2636_v50  ;;  %v210_v50 = vadd.f32 %v178_v61, %v142_v33 }
  0x17   :  { %3618 = vst [vmem:[#allocation18_spill] sm:$0xff] %v2641_v51  ;;  %v164_v54 = vmul.f32 %v2552_v25, %v2568_v29  ;;  %v2653_v56 = vld [vmem:[%s3603_s28 + $0x1a0] sm:$0xff]  ;;  %v196_v7 = vmul.f32 %v2573_v30, %v2641_v51  ;;  %v212_v51 = vadd.f32 %v180_v62, %v144_v34  ;;  %v224_v55 = vadd.f32 %v192_v4, %v154_v46  ;;  %v119_v32 = vld [vmem:[%s3603_s28 + $0x1f0] sm:$0xff] }
  0x18   :  { %3619 = vst [vmem:[#allocation19_spill] sm:$0xff] %v2653_v56  ;;  %v2658_v57 = vld [vmem:[%s3603_s28 + $0x1c0] sm:$0xff]  ;;  %v198_v9 = vmul.f32 %v2573_v30, %v2653_v56  ;;  %v218_v56 = vadd.f32 %v186_v1, %v150_v41 }
  0x19   :  { %3620 = vst [vmem:[#allocation20_spill] sm:$0xff] %v2658_v57  ;;  %v2663_v58 = vld [vmem:[%s3603_s28 + $0x1e0] sm:$0xff]  ;;  %v200_v16 = vmul.f32 %v2573_v30, %v2658_v57  ;;  %v226_v57 = vadd.f32 %v194_v5, %v156_v47  ;;  %v228_v37 = vadd.f32 %v196_v7, %v158_v48 }
  0x1a   :  { %3621 = vst [vmem:[#allocation21_spill] sm:$0xff] %v2663_v58  ;;  %v202_v43 = vmul.f32 %v2573_v30, %v2663_v58  ;;  %v2698_v25 = vld [vmem:[%s3606_s0 + $0x2] ss:$0 sm:$0xff]  ;;  %v87_v30 = vld [vmem:[%s3603_s28 + $0xf0] sm:$0xff]  ;;  %v222_v58 = vadd.f32 %v190_v3, %v152_v45  ;;  %v230_v36 = vadd.f32 %v198_v9, %v160_v52 }
  0x1b   :  { %v232_v35 = vadd.f32 %v200_v16, %v162_v53  ;;  %v242_v31 = vmul.f32 %v2698_v25, %v2472_v6  ;;  %v244_v33 = vmul.f32 %v2698_v25, %v2479_v10  ;;  %v246_v34 = vmul.f32 %v2698_v25, %v2484_v11 }
  0x1c   :  { %v234_v22 = vadd.f32 %v202_v43, %v164_v54  ;;  %v248_v39 = vmul.f32 %v2698_v25, %v2489_v12  ;;  %v250_v40 = vmul.f32 %v2698_v25, %v2494_v13 }
  0x1d   :  { %22 = vsyncpa [#allocation3], 0  ;;  %v252_v6 = vmul.f32 %v2698_v25, %v2499_v14  ;;  %v254_v41 = vmul.f32 %v2698_v25, %v2504_v15  ;;  %v256_v45 = vmul.f32 %v2698_v25, %v87_v30  ;;  %v258_v10 = vmul.f32 %v2698_v25, %v2512_v17  ;;  %v3629_v0 = vld [vmem:[#allocation17_spill] sm:$0xff] }
  0x1e   :  { %v260_v11 = vmul.f32 %v2698_v25, %v2517_v18  ;;  %v262_v12 = vmul.f32 %v2698_v25, %v2522_v19  ;;  %v264_v13 = vmul.f32 %v2698_v25, %v2542_v23  ;;  %v266_v14 = vmul.f32 %v2698_v25, %v2547_v24  ;;  %v2740_v18 = vld [vmem:[%s3606_s0 + $0x3] ss:$0 sm:$0xff]  ;;  %v3630_v2 = vld [vmem:[#allocation18_spill] sm:$0xff] }
  0x1f   :  { %v268_v15 = vmul.f32 %v2698_v25, %v2563_v28  ;;  %v270_v30 = vmul.f32 %v2698_v25, %v2568_v29  ;;  %v272_v17 = vmul.f32 %v2698_v25, %v119_v32  ;;  %v274_v46 = vadd.f32 %v242_v31, %v204_v8  ;;  %v3631_v4 = vld [vmem:[#allocation19_spill] sm:$0xff] }
  0x20   :  { %v276_v19 = vadd.f32 %v244_v33, %v206_v27  ;;  %v278_v47 = vadd.f32 %v246_v34, %v208_v26  ;;  %v280_v23 = vadd.f32 %v248_v39, %v210_v50  ;;  %v282_v48 = vadd.f32 %v250_v40, %v212_v51  ;;  %v3622_v26 = vld [vmem:[#allocation6_spill] sm:$0xff]  ;;  %v3632_v7 = vld [vmem:[#allocation20_spill] sm:$0xff] }
  0x21   :  { %v284_v52 = vadd.f32 %v252_v6, %v214_v49  ;;  %v286_v24 = vadd.f32 %v254_v41, %v216_v44  ;;  %v288_v53 = vadd.f32 %v256_v45, %v218_v56  ;;  %v290_v54 = vadd.f32 %v258_v10, %v220_v42  ;;  %v3623_v49 = vld [vmem:[#allocation11_spill] sm:$0xff]  ;;  %v3624_v42 = vld [vmem:[#allocation12_spill] sm:$0xff]  ;;  %v3625_v56 = vld [vmem:[#allocation13_spill] sm:$0xff] }
  0x22   :  { %v292_v28 = vadd.f32 %v260_v11, %v222_v58  ;;  %v294_v59 = vadd.f32 %v262_v12, %v224_v55  ;;  %v296_v60 = vadd.f32 %v264_v13, %v226_v57  ;;  %v298_v29 = vadd.f32 %v266_v14, %v228_v37  ;;  %v3627_v37 = vld [vmem:[#allocation15_spill] sm:$0xff]  ;;  %v3628_v57 = vld [vmem:[#allocation16_spill] sm:$0xff]  ;;  %v3633_v16 = vld [vmem:[#allocation21_spill] sm:$0xff] }
  0x23   :  { %v300_v61 = vadd.f32 %v268_v15, %v230_v36  ;;  %v302_v62 = vadd.f32 %v270_v30, %v232_v35  ;;  %v304_v8 = vadd.f32 %v272_v17, %v234_v22  ;;  %v312_v63 = vmul.f32 %v2740_v18, %v2527_v20  ;;  %v3626_v35 = vld [vmem:[#allocation14_spill] sm:$0xff] }
  0x24   :  { %v314_v27 = vmul.f32 %v2740_v18, %v2532_v21  ;;  %v316_v50 = vmul.f32 %v2740_v18, %v3622_v26  ;;  %v318_v44 = vmul.f32 %v2740_v18, %v3623_v49  ;;  %v320_v51 = vmul.f32 %v2740_v18, %v3624_v42 }
  0x25   :  { %v322_v36 = vmul.f32 %v2740_v18, %v3625_v56  ;;  %v324_v22 = vmul.f32 %v2740_v18, %v3626_v35  ;;  %v2757_v20 = vmul.f32 0.0, %v2740_v18  ;;  %v327_v21 = vmul.f32 %v2740_v18, %v3627_v37  ;;  %v3642_v35 = vld [vmem:[#allocation9_spill] sm:$0xff] }
  0x26   :  { %v329_v58 = vmul.f32 %v2740_v18, %v3628_v57  ;;  %v331_v1 = vmul.f32 %v2740_v18, %v3629_v0  ;;  %v333_v3 = vmul.f32 %v2740_v18, %v3630_v2  ;;  %v335_v5 = vmul.f32 %v2740_v18, %v3631_v4 }
  0x27   :  { %v337_v9 = vmul.f32 %v2740_v18, %v3632_v7  ;;  %v339_v43 = vmul.f32 %v2740_v18, %v3633_v16  ;;  %v341_v55 = vadd.f32 %v312_v63, %v274_v46  ;;  %v343_v31 = vadd.f32 %v314_v27, %v276_v19  ;;  %v2794_v46 = vld [vmem:[%s3547_s2] ss:$0 sm:$0xff]  ;;  %v2844_v16 = vld [vmem:[%s3547_s2 + $0x2] ss:$0 sm:$0xff] }
  0x28   :  { %v345_v32 = vadd.f32 %v316_v50, %v278_v47  ;;  %v347_v33 = vadd.f32 %v318_v44, %v280_v23  ;;  %v349_v34 = vadd.f32 %v320_v51, %v282_v48  ;;  %v351_v39 = vadd.f32 %v322_v36, %v284_v52  ;;  %3636 = vst [vmem:[#allocation12_spill] sm:$0xff] %v2794_v46  ;;  %v3637_v52 = vld [vmem:[#allocation8_spill] sm:$0xff] }
  0x29   :  { %v353_v40 = vadd.f32 %v324_v22, %v286_v24  ;;  %v355_v6 = vadd.f32 %v2757_v20, %v288_v53  ;;  %v2774_v41 = vadd.f32 %v327_v21, %v290_v54  ;;  %v2776_v45 = vadd.f32 %v329_v58, %v292_v28  ;;  %3645 = vst [vmem:[#allocation19_spill] sm:$0xff] %v2844_v16 }
  0x2a   :  { %v2778_v10 = vadd.f32 %v331_v1, %v294_v59  ;;  %v2780_v11 = vadd.f32 %v333_v3, %v296_v60  ;;  %v2782_v12 = vadd.f32 %v335_v5, %v298_v29  ;;  %v2784_v13 = vadd.f32 %v337_v9, %v300_v61  ;;  %v2835_v3 = vld [vmem:[%s3547_s2 + $0x1] ss:$0 sm:$0xff] }
  0x2b   :  { %v2786_v14 = vadd.f32 %v339_v43, %v302_v62  ;;  %v2789_v15 = vadd.f32 %v2757_v20, %v304_v8  ;;  %v373_v30 = vcombine.low %v341_v55, %v345_v32  ;;  %v374_v17 = vcombine.high %v341_v55, %v345_v32  ;;  %3643 = vst [vmem:[#allocation17_spill] sm:$0xff] %v2835_v3  ;;  %v2849_v43 = vld [vmem:[%s3547_s2 + $0x3] ss:$0 sm:$0xff] }
  0x2c   :  { %3634 = vst [vmem:[#allocation6_spill] sm:$0xff] %v2784_v13  ;;  %v389_v19 = vcombine.low %v343_v31, %v347_v33  ;;  %v390_v47 = vcombine.high %v343_v31, %v347_v33  ;;  %v405_v23 = vcombine.low %v349_v34, %v353_v40  ;;  %v406_v48 = vcombine.high %v349_v34, %v353_v40 }
  0x2d   :  { %3635 = vst [vmem:[#allocation11_spill] sm:$0xff] %v2789_v15  ;;  %v381_v24 = vrot.slane %v373_v30, %v3637_v52  ;;  %v421_v53 = vcombine.low %v351_v39, %v355_v6  ;;  %v422_v54 = vcombine.high %v351_v39, %v355_v6  ;;  %v645_v28 = vcombine.low %v2774_v41, %v2778_v10 }
  0x2e   :  { %v397_v59 = vrot.slane %v389_v19, %v3637_v52  ;;  %v413_v60 = vrot.slane %v405_v23, %v3637_v52  ;;  %v661_v29 = vcombine.low %v2776_v45, %v2780_v11  ;;  %v677_v61 = vcombine.low %v2782_v12, %v2786_v14  ;;  %v2865_v23 = vld [vmem:[%s3603_s28 + $0x18] sm:$0xff] }
  0x2f   :  { %v429_v62 = vrot.slane %v421_v53, %v3637_v52  ;;  %v2807_v8 = vrot.slane %v645_v28, %v3637_v52  ;;  %v693_v63 = vcombine.low %v2784_v13, %v2789_v15  ;;  %v923_v27 = vmul.f32 0.0, %v2794_v46  ;;  %v2875_v28 = vld [vmem:[%s3603_s28 + $0x38] sm:$0xff] }
  0x30   :  { %v437_v26 = vcombine.low %v381_v24, %v397_v59  ;;  %v438_v50 = vcombine.high %v381_v24, %v397_v59  ;;  %v2813_v49 = vrot.slane %v661_v29, %v3637_v52  ;;  %v2816_v44 = vrot.slane %v677_v61, %v3637_v52 }
  0x31   :  { %3638 = vst [vmem:[#allocation13_spill] sm:$0xff] %v2807_v8  ;;  %v469_v42 = vcombine.low %v413_v60, %v429_v62  ;;  %v470_v51 = vcombine.high %v413_v60, %v429_v62  ;;  %v2819_v56 = vrot.slane %v693_v63, %v3637_v52  ;;  %v388_v36 = vrot.slane %v374_v17, %v3637_v52 }
  0x32   :  { %3639 = vst [vmem:[#allocation14_spill] sm:$0xff] %v2813_v49  ;;  %3640 = vst [vmem:[#allocation15_spill] sm:$0xff] %v2816_v44  ;;  %v445_v22 = vrot.slane %v437_v26, %v3642_v35  ;;  %v452_v37 = vrot.slane %v438_v50, %v3642_v35  ;;  %v709_v21 = vcombine.low %v2807_v8, %v2813_v49  ;;  %vm1057_vm1 = vcmask 31744   ;;  %v68_v50 = vld [vmem:[%s3603_s28 + $0x58] sm:$0xff] }
  0x33   :  { %3641 = vst [vmem:[#allocation16_spill] sm:$0xff] %v2819_v56  ;;  %v404_v57 = vrot.slane %v390_v47, %v3637_v52  ;;  %v477_v58 = vrot.slane %v469_v42, %v3642_v35  ;;  %v484_v0 = vrot.slane %v470_v51, %v3642_v35  ;;  %v741_v1 = vcombine.low %v2816_v44, %v2819_v56  ;;  %v72_v42 = vld [vmem:[%s3603_s28 + $0x78] sm:$0xff] }
  0x34   :  { %v420_v2 = vrot.slane %v406_v48, %v3637_v52  ;;  %v2838_v4 = vrot.slane %v709_v21, %v3642_v35  ;;  %v436_v5 = vrot.slane %v422_v54, %v3637_v52  ;;  %v3647_v51 = vld [vmem:[#allocation7_spill] sm:$0xff]  ;;  %v243_v15 = vmul.f32 %v2698_v25, %v2865_v23 }
  0x35   :  { %v453_v7 = vcombine.low %v388_v36, %v404_v57  ;;  %v454_v9 = vcombine.high %v388_v36, %v404_v57  ;;  %v501_v55 = vcombine.low %v445_v22, %v477_v58  ;;  %v502_v31 = vcombine.high %v445_v22, %v477_v58  ;;  %v76_v57 = vld [vmem:[%s3603_s28 + $0x98] sm:$0xff] }
  0x36   :  { %3644 = vst [vmem:[#allocation18_spill] sm:$0xff] %v2838_v4  ;;  %v503_v32 = vcombine.low %v452_v37, %v484_v0  ;;  %v504_v33 = vcombine.high %v452_v37, %v484_v0  ;;  %v2852_v34 = vrot.slane %v741_v1, %v3642_v35  ;;  %v485_v40 = vcombine.low %v420_v2, %v436_v5  ;;  %v80_v58 = vld [vmem:[%s3603_s28 + $0xb8] sm:$0xff] }
  0x37   :  { %v461_v39 = vrot.slane %v453_v7, %v3642_v35  ;;  %v2856_v6 = vrot.slane %v454_v9, %v3642_v35  ;;  %v924_v30 = vmul.f32 %v2794_v46, %v502_v31  ;;  %v944_v19 = vmul.f32 %v2835_v3, %v501_v55  ;;  %v58_v9 = vld [vmem:[%s3603_s28 + $0x8] sm:$0xff] }
  0x38   :  { %3646 = vst [vmem:[#allocation20_spill] sm:$0xff] %v2852_v34  ;;  %v925_v17 = vmul.f32 %v2794_v46, %v504_v33  ;;  %v945_v47 = vmul.f32 %v2835_v3, %v503_v32  ;;  %v773_v48 = vcombine.low %v2838_v4, %v2852_v34  ;;  %v982_v24 = vmul.f32 %v2844_v16, %v502_v31  ;;  %v62_v55 = vld [vmem:[%s3603_s28 + $0x28] sm:$0xff] }
  0x39   :  { %v1020_v53 = vmul.f32 %v2849_v43, %v503_v32  ;;  %v493_v54 = vrot.slane %v485_v40, %v3642_v35  ;;  %v960_v59 = vadd.f32 %v944_v19, %v923_v27  ;;  %v983_v29 = vmul.f32 %v2844_v16, %v504_v33  ;;  %v66_v33 = vld [vmem:[%s3603_s28 + $0x48] sm:$0xff] }
  0x3a   :  { %v961_v60 = vadd.f32 %v945_v47, %v924_v30  ;;  %v486_v61 = vcombine.high %v420_v2, %v436_v5  ;;  %v952_v62 = vmul.f32 %v2835_v3, %v773_v48  ;;  %v139_v36 = vmul.f32 %v3647_v51, %v2865_v23  ;;  %v74_v40 = vld [vmem:[%s3603_s28 + $0x88] sm:$0xff] }
  0x3b   :  { %v505_v63 = vcombine.low %v461_v39, %v493_v54  ;;  %v2879_v26 = vcombine.high %v461_v39, %v493_v54  ;;  %v998_v22 = vadd.f32 %v982_v24, %v960_v59  ;;  %v141_v0 = vmul.f32 %v3647_v51, %v2875_v28  ;;  %v70_v39 = vld [vmem:[%s3603_s28 + $0x68] sm:$0xff] }
  0x3c   :  { %v999_v37 = vadd.f32 %v983_v29, %v961_v60  ;;  %v2890_v21 = vrot.slane %v486_v61, %v3642_v35  ;;  %v2900_v1 = vadd.f32 %v952_v62, %v923_v27  ;;  %v84_v27 = vld [vmem:[%s3603_s28 + $0xd8] sm:$0xff]  ;;  %v143_v30 = vmul.f32 %v3647_v51, %v68_v50  ;;  %v78_v24 = vld [vmem:[%s3603_s28 + $0xa8] sm:$0xff] }
  0x3d   :  { %v1021_v2 = vmul.f32 %v2849_v43, %v505_v63  ;;  %v946_v5 = vmul.f32 %v2835_v3, %v505_v63  ;;  %v984_v7 = vmul.f32 %v2844_v16, %v2879_v26  ;;  %v1035_v31 = vadd.f32 %v1020_v53, %v998_v22  ;;  %v82_v53 = vld [vmem:[%s3603_s28 + $0xc8] sm:$0xff] }
  0x3e   :  { %3648 = vst [vmem:[#allocation21_spill] sm:$0xff] %v2900_v1  ;;  %v2917_v32 = vcombine.low %v2856_v6, %v2890_v21  ;;  %v145_v19 = vmul.f32 %v3647_v51, %v72_v42  ;;  %v86_v54 = vld [vmem:[%s3603_s28 + $0xe8] sm:$0xff]  ;;  %v147_v59 = vmul.f32 %v3647_v51, %v76_v57  ;;  %v149_v60 = vmul.f32 %v3647_v51, %v80_v58 }
  0x3f   :  { %v1036_v47 = vadd.f32 %v1021_v2, %v999_v37  ;;  %v962_v48 = vadd.f32 %v946_v5, %v925_v17  ;;  %2288 = vmatprep.mubr.msk.f32.mxu0 %vm1057_vm1, %v1035_v31  ;;  %v151_v29 = vmul.f32 %v3647_v51, %v84_v27  ;;  %v3649_v61 = vld [vmem:[#allocation10_spill] sm:$0xff]  ;;  %vm1592_vm2 = vcmask 130048  }
  0x40   :  { %v1022_v17 = vmul.f32 %v2849_v43, %v2917_v32  ;;  %v173_v62 = vmul.f32 %v3649_v61, %v58_v9  ;;  %v175_v63 = vmul.f32 %v3649_v61, %v62_v55  ;;  %v177_v37 = vmul.f32 %v3649_v61, %v66_v33 }
  0x41   :  { %2289 = vmatmul.mubr.msk.f32.vlgmr.msra.gmra.mxu0 %vm1057_vm1, %v1036_v47  ;;  %v1000_v22 = vadd.f32 %v984_v7, %v962_v48  ;;  %v179_v2 = vmul.f32 %v3649_v61, %v70_v39  ;;  %v181_v5 = vmul.f32 %v3649_v61, %v74_v40  ;;  %v183_v31 = vmul.f32 %v3649_v61, %v78_v24  ;;  %v88_v47 = vld [vmem:[%s3603_s28 + $0xf8] sm:$0xff] }
  0x42   :  { %v185_v1 = vmul.f32 %v3649_v61, %v82_v53  ;;  %v187_v4 = vmul.f32 %v3649_v61, %v86_v54  ;;  %v205_v34 = vadd.f32 %v173_v62, %v2599_v38  ;;  %v207_v7 = vadd.f32 %v175_v63, %v139_v36 }
  0x43   :  { %v1037_v9 = vadd.f32 %v1022_v17, %v1000_v22  ;;  %v209_v48 = vadd.f32 %v177_v37, %v141_v0  ;;  %v211_v44 = vadd.f32 %v179_v2, %v143_v30  ;;  %v213_v56 = vadd.f32 %v181_v5, %v145_v19 }
  0x44   :  { %v215_v8 = vadd.f32 %v183_v31, %v147_v59  ;;  %v217_v49 = vadd.f32 %v185_v1, %v149_v60  ;;  %v219_v13 = vadd.f32 %v187_v4, %v151_v29  ;;  %v245_v62 = vmul.f32 %v2698_v25, %v2875_v28 }
  0x45   :  { %2291 = vmatprep.mubr.msk.f32.mxu0 %vm1057_vm1, %v1037_v9  ;;  %v247_v17 = vmul.f32 %v2698_v25, %v68_v50  ;;  %v249_v22 = vmul.f32 %v2698_v25, %v72_v42  ;;  %v251_v36 = vmul.f32 %v2698_v25, %v76_v57  ;;  %v253_v0 = vmul.f32 %v2698_v25, %v80_v58 }
  0x46   :  { %v255_v30 = vmul.f32 %v2698_v25, %v84_v27  ;;  %v257_v4 = vmul.f32 %v2698_v25, %v88_v47  ;;  %v275_v1 = vadd.f32 %v243_v15, %v205_v34  ;;  %v277_v19 = vadd.f32 %v245_v62, %v207_v7 }
  0x47   :  { %v279_v59 = vadd.f32 %v247_v17, %v209_v48  ;;  %v281_v60 = vadd.f32 %v249_v22, %v211_v44  ;;  %v283_v23 = vadd.f32 %v251_v36, %v213_v56  ;;  %v285_v29 = vadd.f32 %v253_v0, %v215_v8 }
  0x48   :  { %v287_v63 = vadd.f32 %v255_v30, %v217_v49  ;;  %v289_v28 = vadd.f32 %v257_v4, %v219_v13  ;;  %v313_v50 = vmul.f32 %v2740_v18, %v62_v55  ;;  %v315_v42 = vmul.f32 %v2740_v18, %v66_v33  ;;  %v3000_v4 = vld [vmem:[%s3603_s28 + $0x138] sm:$0xff] }
  0x49   :  { %v317_v57 = vmul.f32 %v2740_v18, %v70_v39  ;;  %v319_v58 = vmul.f32 %v2740_v18, %v74_v40  ;;  %v321_v27 = vmul.f32 %v2740_v18, %v78_v24  ;;  %v323_v37 = vmul.f32 %v2740_v18, %v82_v53 }
  0x4a   :  { %v325_v15 = vmul.f32 %v2740_v18, %v86_v54  ;;  %v356_v44 = vadd.f32 %v2757_v20, %v289_v28  ;;  %v342_v56 = vadd.f32 %v313_v50, %v275_v1  ;;  %v344_v8 = vadd.f32 %v315_v42, %v277_v19 }
  0x4b   :  { %v346_v49 = vadd.f32 %v317_v57, %v279_v59  ;;  %v348_v13 = vadd.f32 %v319_v58, %v281_v60  ;;  %v350_v34 = vadd.f32 %v321_v27, %v283_v23  ;;  %v352_v55 = vadd.f32 %v323_v37, %v285_v29  ;;  %v3011_v23 = vld [vmem:[%s3603_s28 + $0x158] sm:$0xff] }
  0x4c   :  { %v354_v2 = vadd.f32 %v325_v15, %v287_v63  ;;  %v508_v33 = vcombine.high %v2856_v6, %v2890_v21  ;;  %v926_v24 = vmul.f32 %v2794_v46, %v2879_v26  ;;  %v947_v53 = vmul.f32 %v2835_v3, %v2917_v32  ;;  %v2992_v32 = vld [vmem:[%s3603_s28 + $0x118] sm:$0xff] }
  0x4d   :  { %v509_v39 = vcombine.low %v342_v56, %v346_v49  ;;  %v525_v40 = vcombine.low %v344_v8, %v348_v13  ;;  %v557_v5 = vcombine.low %v352_v55, %v356_v44  ;;  %v510_v6 = vcombine.high %v342_v56, %v346_v49  ;;  %v3016_v29 = vld [vmem:[%s3603_s28 + $0x178] sm:$0xff] }
  0x4e   :  { %v541_v54 = vcombine.low %v350_v34, %v354_v2  ;;  %v985_v31 = vmul.f32 %v2844_v16, %v508_v33  ;;  %v927_v9 = vmul.f32 %v2794_v46, %v508_v33  ;;  %v963_v48 = vadd.f32 %v947_v53, %v926_v24  ;;  %v3021_v63 = vld [vmem:[%s3603_s28 + $0x198] sm:$0xff]  ;;  %v90_v53 = vld [vmem:[%s3603_s28 + $0x108] sm:$0xff] }
  0x4f   :  { %v517_v47 = vrot.slane %v509_v39, %v3637_v52  ;;  %v533_v7 = vrot.slane %v525_v40, %v3637_v52  ;;  %v565_v62 = vrot.slane %v557_v5, %v3637_v52  ;;  %v526_v26 = vcombine.high %v344_v8, %v348_v13  ;;  %v3034_v15 = vld [vmem:[%s3603_s28 + $0x1b8] sm:$0xff] }
  0x50   :  { %v549_v21 = vrot.slane %v541_v54, %v3637_v52  ;;  %v542_v17 = vcombine.high %v350_v34, %v354_v2  ;;  %v1001_v36 = vadd.f32 %v985_v31, %v963_v48  ;;  %v2995_v30 = vrot.slane %v510_v6, %v3637_v52  ;;  %v3039_v56 = vld [vmem:[%s3603_s28 + $0x1d8] sm:$0xff]  ;;  %v94_v54 = vld [vmem:[%s3603_s28 + $0x128] sm:$0xff] }
  0x51   :  { %v573_v22 = vcombine.low %v517_v47, %v533_v7  ;;  %v574_v0 = vcombine.high %v517_v47, %v533_v7  ;;  %v3003_v59 = vrot.slane %v526_v26, %v3637_v52  ;;  %v558_v42 = vcombine.high %v352_v55, %v356_v44 }
  0x52   :  { %v605_v1 = vcombine.low %v549_v21, %v565_v62  ;;  %v606_v19 = vcombine.high %v549_v21, %v565_v62  ;;  %v3006_v60 = vrot.slane %v542_v17, %v3637_v52  ;;  %v153_v57 = vmul.f32 %v3647_v51, %v2992_v32  ;;  %v98_v21 = vld [vmem:[%s3603_s28 + $0x148] sm:$0xff] }
  0x53   :  { %v581_v28 = vrot.slane %v573_v22, %v3642_v35  ;;  %v588_v50 = vrot.slane %v574_v0, %v3642_v35  ;;  %v589_v37 = vcombine.low %v2995_v30, %v3003_v59  ;;  %v155_v44 = vmul.f32 %v3647_v51, %v3000_v4  ;;  %v102_v62 = vld [vmem:[%s3603_s28 + $0x168] sm:$0xff] }
  0x54   :  { %v613_v58 = vrot.slane %v605_v1, %v3642_v35  ;;  %v620_v27 = vrot.slane %v606_v19, %v3642_v35  ;;  %v3044_v8 = vrot.slane %v558_v42, %v3637_v52  ;;  %v157_v49 = vmul.f32 %v3647_v51, %v3011_v23  ;;  %v106_v0 = vld [vmem:[%s3603_s28 + $0x188] sm:$0xff] }
  0x55   :  { %v159_v13 = vmul.f32 %v3647_v51, %v3016_v29  ;;  %v161_v34 = vmul.f32 %v3647_v51, %v3021_v63  ;;  %v3053_v39 = vrot.slane %v589_v37, %v3642_v35  ;;  %v163_v5 = vmul.f32 %v3647_v51, %v3034_v15  ;;  %v110_v1 = vld [vmem:[%s3603_s28 + $0x1a8] sm:$0xff] }
  0x56   :  { %v637_v55 = vcombine.low %v581_v28, %v613_v58  ;;  %v638_v2 = vcombine.high %v581_v28, %v613_v58  ;;  %v639_v33 = vcombine.low %v588_v50, %v620_v27  ;;  %v621_v40 = vcombine.low %v3006_v60, %v3044_v8  ;;  %v114_v19 = vld [vmem:[%s3603_s28 + $0x1c8] sm:$0xff] }
  0x57   :  { %3650 = vst [vmem:[#allocation8_spill] sm:$0xff] %v3053_v39  ;;  %v3057_v24 = vcombine.high %v588_v50, %v620_v27  ;;  %v165_v31 = vmul.f32 %v3647_v51, %v3039_v56  ;;  %v118_v42 = vld [vmem:[%s3603_s28 + $0x1e8] sm:$0xff]  ;;  %v189_v58 = vmul.f32 %v3649_v61, %v90_v53  ;;  %v191_v27 = vmul.f32 %v3649_v61, %v94_v54 }
  0x58   :  { %v1023_v47 = vmul.f32 %v2849_v43, %v637_v55  ;;  %v948_v7 = vmul.f32 %v2835_v3, %v637_v55  ;;  %v986_v48 = vmul.f32 %v2844_v16, %v638_v2  ;;  %v1024_v6 = vmul.f32 %v2849_v43, %v639_v33 }
  0x59   :  { %3651 = vst [vmem:[#allocation9_spill] sm:$0xff] %v3057_v24  ;;  %v3080_v26 = vrot.slane %v621_v40, %v3642_v35  ;;  %v928_v51 = vmul.f32 %v2794_v46, %v638_v2  ;;  %v949_v17 = vmul.f32 %v2835_v3, %v639_v33  ;;  %v987_v22 = vmul.f32 %v2844_v16, %v3057_v24 }
  0x5a   :  { %v1038_v28 = vadd.f32 %v1023_v47, %v1001_v36  ;;  %v964_v50 = vadd.f32 %v948_v7, %v927_v9  ;;  %v193_v2 = vmul.f32 %v3649_v61, %v98_v21  ;;  %v195_v33 = vmul.f32 %v3649_v61, %v102_v62 }
  0x5b   :  { %3652 = vst [vmem:[#allocation7_spill] sm:$0xff] %v3080_v26  ;;  %v3102_v37 = vcombine.low %v3053_v39, %v3080_v26  ;;  %v965_v55 = vadd.f32 %v949_v17, %v928_v51  ;;  %v197_v36 = vmul.f32 %v3649_v61, %v106_v0  ;;  %v199_v40 = vmul.f32 %v3649_v61, %v110_v1 }
  0x5c   :  { %2292 = vmatmul.mubr.msk.f32.gmra.mxu0 %vm1057_vm1, %v1038_v28  ;;  %v1002_v9 = vadd.f32 %v986_v48, %v964_v50  ;;  %v201_v53 = vmul.f32 %v3649_v61, %v114_v19  ;;  %v203_v16 = vmul.f32 %v3649_v61, %v118_v42  ;;  %v221_v51 = vadd.f32 %v189_v58, %v2599_v38  ;;  %v120_v48 = vld [vmem:[%s3603_s28 + $0x1f8] sm:$0xff] }
  0x5d   :  { %v1003_v47 = vadd.f32 %v987_v22, %v965_v55  ;;  %v1025_v7 = vmul.f32 %v2849_v43, %v3102_v37  ;;  %v223_v3 = vadd.f32 %v191_v27, %v153_v57  ;;  %v225_v24 = vadd.f32 %v193_v2, %v155_v44 }
  0x5e   :  { %v1039_v17 = vadd.f32 %v1024_v6, %v1002_v9  ;;  %v227_v46 = vadd.f32 %v195_v33, %v157_v49  ;;  %v229_v50 = vadd.f32 %v197_v36, %v159_v13  ;;  %v231_v39 = vadd.f32 %v199_v40, %v161_v34 }
  0x5f   :  { %v1040_v28 = vadd.f32 %v1025_v7, %v1003_v47  ;;  %v233_v26 = vadd.f32 %v201_v53, %v163_v5  ;;  %v235_v22 = vadd.f32 %v203_v16, %v165_v31  ;;  %v259_v61 = vmul.f32 %v2698_v25, %v2992_v32 }
  0x60   :  { %2294 = vmatprep.mubr.msk.f32.mxu0 %vm1057_vm1, %v1039_v17  ;;  %v261_v38 = vmul.f32 %v2698_v25, %v3000_v4  ;;  %v263_v57 = vmul.f32 %v2698_v25, %v3011_v23  ;;  %v265_v44 = vmul.f32 %v2698_v25, %v3016_v29  ;;  %v267_v49 = vmul.f32 %v2698_v25, %v3021_v63 }
  0x61   :  { %2295 = vmatmul.mubr.msk.f32.gmra.mxu0 %vm1057_vm1, %v1040_v28  ;;  %v269_v16 = vmul.f32 %v2698_v25, %v3034_v15  ;;  %v271_v32 = vmul.f32 %v2698_v25, %v3039_v56  ;;  %v273_v13 = vmul.f32 %v2698_v25, %v120_v48  ;;  %v291_v4 = vadd.f32 %v259_v61, %v221_v51 }
  0x62   :  { %v293_v34 = vadd.f32 %v261_v38, %v223_v3  ;;  %v295_v5 = vadd.f32 %v263_v57, %v225_v24  ;;  %v297_v23 = vadd.f32 %v265_v44, %v227_v46  ;;  %v299_v31 = vadd.f32 %v267_v49, %v229_v50 }
  0x63   :  { %v301_v6 = vadd.f32 %v269_v16, %v231_v39  ;;  %v303_v58 = vadd.f32 %v271_v32, %v233_v26  ;;  %v305_v27 = vadd.f32 %v273_v13, %v235_v22  ;;  %v328_v29 = vmul.f32 %v2740_v18, %v94_v54 }
  0x64   :  { %v330_v63 = vmul.f32 %v2740_v18, %v98_v21  ;;  %v332_v55 = vmul.f32 %v2740_v18, %v102_v62  ;;  %v334_v15 = vmul.f32 %v2740_v18, %v106_v0  ;;  %v336_v56 = vmul.f32 %v2740_v18, %v110_v1  ;;  %v3653_v1 = vld [vmem:[#allocation11_spill] sm:$0xff] }
  0x65   :  { %v338_v25 = vmul.f32 %v2740_v18, %v114_v19  ;;  %v340_v3 = vmul.f32 %v2740_v18, %v118_v42  ;;  %v358_v24 = vadd.f32 %v328_v29, %v291_v4  ;;  %v372_v39 = vadd.f32 %v2757_v20, %v305_v27  ;;  %v3654_v18 = vld [vmem:[#allocation6_spill] sm:$0xff]  ;;  %v3655_v29 = vld [vmem:[#allocation7_spill] sm:$0xff] }
  0x66   :  { %v360_v46 = vadd.f32 %v330_v63, %v293_v34  ;;  %v362_v2 = vadd.f32 %v332_v55, %v295_v5  ;;  %v364_v26 = vadd.f32 %v334_v15, %v297_v23  ;;  %v366_v33 = vadd.f32 %v336_v56, %v299_v31  ;;  %v3656_v63 = vld [vmem:[#allocation8_spill] sm:$0xff] }
  0x67   :  { %v368_v54 = vadd.f32 %v338_v25, %v301_v6  ;;  %v370_v9 = vadd.f32 %v340_v3, %v303_v58  ;;  %v646_v21 = vcombine.high %v2774_v41, %v2778_v10  ;;  %v662_v62 = vcombine.high %v2776_v45, %v2780_v11  ;;  %v3657_v25 = vld [vmem:[#allocation12_spill] sm:$0xff] }
  0x68   :  { %v678_v0 = vcombine.high %v2782_v12, %v2786_v14  ;;  %v694_v19 = vcombine.high %v3654_v18, %v3653_v1  ;;  %v781_v42 = vcombine.low %v358_v24, %v362_v2  ;;  %v782_v36 = vcombine.high %v358_v24, %v362_v2 }
  0x69   :  { %v797_v40 = vcombine.low %v360_v46, %v364_v26  ;;  %v798_v20 = vcombine.high %v360_v46, %v364_v26  ;;  %v3151_v53 = vrot.slane %v646_v21, %v3637_v52  ;;  %v3154_v47 = vrot.slane %v662_v62, %v3637_v52  ;;  %v3659_v21 = vld [vmem:[#allocation17_spill] sm:$0xff] }
  0x6a   :  { %v3157_v41 = vrot.slane %v678_v0, %v3637_v52  ;;  %v3160_v45 = vrot.slane %v694_v19, %v3637_v52  ;;  %v789_v10 = vrot.slane %v781_v42, %v3637_v52  ;;  %v813_v12 = vcombine.low %v366_v33, %v370_v9  ;;  %v3660_v0 = vld [vmem:[#allocation19_spill] sm:$0xff] }
  0x6b   :  { %v805_v11 = vrot.slane %v797_v40, %v3637_v52  ;;  %v814_v14 = vcombine.high %v366_v33, %v370_v9  ;;  %v726_v7 = vcombine.high %v3151_v53, %v3154_v47  ;;  %v829_v17 = vcombine.low %v368_v54, %v372_v39 }
  0x6c   :  { %v758_v51 = vcombine.high %v3157_v41, %v3160_v45  ;;  %v830_v28 = vcombine.high %v368_v54, %v372_v39  ;;  %v821_v48 = vrot.slane %v813_v12, %v3637_v52  ;;  %v796_v61 = vrot.slane %v782_v36, %v3637_v52 }
  0x6d   :  { %v845_v50 = vcombine.low %v789_v10, %v805_v11  ;;  %v846_v22 = vcombine.high %v789_v10, %v805_v11  ;;  %v3171_v38 = vrot.slane %v726_v7, %v3642_v35  ;;  %v837_v44 = vrot.slane %v829_v17, %v3637_v52 }
  0x6e   :  { %v3174_v57 = vrot.slane %v758_v51, %v3642_v35  ;;  %v812_v49 = vrot.slane %v798_v20, %v3637_v52  ;;  %v828_v13 = vrot.slane %v814_v14, %v3637_v52  ;;  %v844_v4 = vrot.slane %v830_v28, %v3637_v52 }
  0x6f   :  { %v853_v16 = vrot.slane %v845_v50, %v3642_v35  ;;  %v860_v32 = vrot.slane %v846_v22, %v3642_v35  ;;  %v877_v5 = vcombine.low %v821_v48, %v837_v44  ;;  %v878_v23 = vcombine.high %v821_v48, %v837_v44 }
  0x70   :  { %v3184_v34 = vcombine.high %v3171_v38, %v3174_v57  ;;  %v861_v31 = vcombine.low %v796_v61, %v812_v49  ;;  %v893_v6 = vcombine.low %v828_v13, %v844_v4  ;;  %v590_v58 = vcombine.high %v2995_v30, %v3003_v59  ;;  %v3658_v59 = vld [vmem:[#allocation9_spill] sm:$0xff] }
  0x71   :  { %v622_v27 = vcombine.high %v3006_v60, %v3044_v8  ;;  %v642_v55 = vcombine.high %v3656_v63, %v3655_v29  ;;  %v885_v15 = vrot.slane %v877_v5, %v3642_v35  ;;  %v892_v56 = vrot.slane %v878_v23, %v3642_v35 }
  0x72   :  { %v934_v3 = vmul.f32 %v3657_v25, %v3184_v34  ;;  %v869_v24 = vrot.slane %v861_v31, %v3642_v35  ;;  %v901_v46 = vrot.slane %v893_v6, %v3642_v35  ;;  %v604_v2 = vrot.slane %v590_v58, %v3642_v35 }
  0x73   :  { %v636_v30 = vrot.slane %v622_v27, %v3642_v35  ;;  %v929_v60 = vmul.f32 %v3657_v25, %v3658_v59  ;;  %v3202_v8 = vcombine.low %v853_v16, %v885_v15  ;;  %v910_v39 = vcombine.high %v853_v16, %v885_v15 }
  0x74   :  { %v911_v26 = vcombine.low %v860_v32, %v892_v56  ;;  %v912_v33 = vcombine.high %v860_v32, %v892_v56  ;;  %v913_v54 = vcombine.low %v869_v24, %v901_v46  ;;  %v950_v62 = vmul.f32 %v3659_v21, %v3102_v37 }
  0x75   :  { %v643_v9 = vcombine.low %v604_v2, %v636_v30  ;;  %v988_v1 = vmul.f32 %v3660_v0, %v642_v55  ;;  %v935_v18 = vmul.f32 %v3657_v25, %v910_v39  ;;  %v956_v42 = vmul.f32 %v3659_v21, %v3202_v8 }
  0x76   :  { %v936_v19 = vmul.f32 %v3657_v25, %v912_v33  ;;  %v957_v36 = vmul.f32 %v3659_v21, %v911_v26  ;;  %v994_v40 = vmul.f32 %v3660_v0, %v910_v39  ;;  %v1032_v20 = vmul.f32 %v2849_v43, %v911_v26 }
  0x77   :  { %v995_v10 = vmul.f32 %v3660_v0, %v912_v33  ;;  %v1033_v11 = vmul.f32 %v2849_v43, %v913_v54  ;;  %v972_v37 = vadd.f32 %v956_v42, %v934_v3  ;;  %v966_v14 = vadd.f32 %v950_v62, %v929_v60  ;;  %v3663_v3 = vld [vmem:[#allocation16_spill] sm:$0xff] }
  0x78   :  { %v973_v12 = vadd.f32 %v957_v36, %v935_v18  ;;  %v1026_v7 = vmul.f32 %v2849_v43, %v643_v9  ;;  %v644_v51 = vcombine.high %v604_v2, %v636_v30  ;;  %v930_v17 = vmul.f32 %v3657_v25, %v642_v55  ;;  %v3665_v33 = vld [vmem:[#allocation20_spill] sm:$0xff] }
  0x79   :  { %v951_v28 = vmul.f32 %v3659_v21, %v643_v9  ;;  %v1027_v48 = vmul.f32 0.0, %v2849_v43  ;;  %v1010_v50 = vadd.f32 %v994_v40, %v972_v37  ;;  %v1004_v44 = vadd.f32 %v988_v1, %v966_v14 }
  0x7a   :  { %v1011_v22 = vadd.f32 %v995_v10, %v973_v12  ;;  %v862_v16 = vcombine.high %v796_v61, %v812_v49  ;;  %v989_v5 = vmul.f32 %v3660_v0, %v644_v51  ;;  %v894_v23 = vcombine.high %v828_v13, %v844_v4  ;;  %v3661_v49 = vld [vmem:[#allocation14_spill] sm:$0xff]  ;;  %v3662_v13 = vld [vmem:[#allocation13_spill] sm:$0xff] }
  0x7b   :  { %v967_v32 = vadd.f32 %v951_v28, %v930_v17  ;;  %v914_v31 = vcombine.high %v869_v24, %v901_v46  ;;  %v1047_v6 = vadd.f32 %v1032_v20, %v1010_v50  ;;  %v1041_v27 = vadd.f32 %v1026_v7, %v1004_v44  ;;  %v3664_v24 = vld [vmem:[#allocation15_spill] sm:$0xff]  ;;  %v3667_v12 = vld [vmem:[#allocation21_spill] sm:$0xff] }
  0x7c   :  { %v1048_v58 = vadd.f32 %v1033_v11, %v1011_v22  ;;  %v876_v29 = vrot.slane %v862_v16, %v3642_v35  ;;  %v908_v55 = vrot.slane %v894_v23, %v3642_v35  ;;  %v958_v15 = vmul.f32 %v3659_v21, %v913_v54  ;;  %v3666_v54 = vld [vmem:[#allocation18_spill] sm:$0xff] }
  0x7d   :  { %v1005_v63 = vadd.f32 %v989_v5, %v967_v32  ;;  %v996_v56 = vmul.f32 %v3660_v0, %v914_v31  ;;  %2306 = vmatprep.mubr.msk.f32.mxu1 %vm1057_vm1, %v1047_v6  ;;  %2297 = vmatprep.mubr.msk.f32.mxu0 %vm1057_vm1, %v1041_v27  ;;  %v937_v61 = vmul.f32 %v3657_v25, %v914_v31  ;;  %vm2371_vm3 = vmmov 0  }
  0x7e   :  { %v710_v4 = vcombine.high %v3662_v13, %v3661_v49  ;;  %v742_v46 = vcombine.high %v3664_v24, %v3663_v3  ;;  %2307 = vmatmul.mubr.msk.f32.vlgmr.msra.gmra.mxu1 %vm1057_vm1, %v1048_v58  ;;  %v915_v30 = vcombine.low %v876_v29, %v908_v55  ;;  %v974_v59 = vadd.f32 %v958_v15, %v936_v19 }
  0x7f   :  { %v1042_v2 = vadd.f32 %v1027_v48, %v1005_v63  ;;  %v916_v60 = vcombine.high %v876_v29, %v908_v55  ;;  %v774_v9 = vcombine.high %v3666_v54, %v3665_v33  ;;  %v725_v62 = vcombine.low %v3151_v53, %v3154_v47  ;;  %v3292_v54 = vld [vmem:[%s3551_s6 + $0x1] ss:$0 sm:$0xff] }
  0x80   :  { %v724_v39 = vrot.slane %v710_v4, %v3642_v35  ;;  %v756_v26 = vrot.slane %v742_v46, %v3642_v35  ;;  %v1012_v1 = vadd.f32 %v996_v56, %v974_v59  ;;  %v1034_v18 = vmul.f32 %v2849_v43, %v915_v30  ;;  %v3282_v46 = vld [vmem:[%s3549_s4] ss:$0 sm:$0xff] }
  0x81   :  { %2298 = vmatmul.mubr.msk.f32.gmra.mxu0 %vm1057_vm1, %v1042_v2  ;;  %v959_v42 = vmul.f32 %v3659_v21, %v915_v30  ;;  %v997_v19 = vmul.f32 %v3660_v0, %v916_v60  ;;  %v990_v40 = vmul.f32 %v3660_v0, %v774_v9  ;;  %v733_v20 = vrot.slane %v725_v62, %v3642_v35 }
  0x82   :  { %v775_v36 = vcombine.low %v724_v39, %v756_v26  ;;  %v757_v10 = vcombine.low %v3157_v41, %v3160_v45  ;;  %v1049_v11 = vadd.f32 %v1034_v18, %v1012_v1  ;;  %v776_v53 = vcombine.high %v724_v39, %v756_v26  ;;  %v3298_v18 = vld [vmem:[%s3551_s6] ss:$0 sm:$0xff] }
  0x83   :  { %v975_v37 = vadd.f32 %v959_v42, %v937_v61  ;;  %v931_v47 = vmul.f32 %v3657_v25, %v774_v9  ;;  %v1006_v14 = vadd.f32 %v990_v40, %v3667_v12  ;;  %v779_v41 = vcombine.low %v3171_v38, %v3174_v57 }
  0x84   :  { %v1028_v7 = vmul.f32 %v2849_v43, %v775_v36  ;;  %v765_v51 = vrot.slane %v757_v10, %v3642_v35  ;;  %v953_v17 = vmul.f32 %v3659_v21, %v775_v36  ;;  %2309 = vmatprep.mubr.msk.f32.mxu1 %vm1057_vm1, %v1049_v11  ;;  %v991_v50 = vmul.f32 %v3660_v0, %v776_v53 }
  0x85   :  { %v1013_v28 = vadd.f32 %v997_v19, %v975_v37  ;;  %v932_v45 = vmul.f32 %v3657_v25, %v776_v53  ;;  %v955_v23 = vmul.f32 %v3659_v21, %v779_v41  ;;  %v993_v57 = vmul.f32 %v3660_v0, %v3184_v34  ;;  %v1280_v34 = vld [vmem:[%s3552_s7 + $0x8] sm:$0xff] }
  0x86   :  { %v1043_v22 = vadd.f32 %v1028_v7, %v1006_v14  ;;  %v777_v44 = vcombine.low %v733_v20, %v765_v51  ;;  %v969_v16 = vadd.f32 %v953_v17, %v931_v47  ;;  %v778_v32 = vcombine.high %v733_v20, %v765_v51  ;;  %2312 = vmatprep.subr.mxu1 %v1280_v34  ;;  %v3310_v47 = vld [vmem:[%s3551_s6 + $0x2] ss:$0 sm:$0xff] }
  0x87   :  { %v1050_v5 = vadd.f32 %v1027_v48, %v1013_v28  ;;  %v1030_v63 = vmul.f32 %v2849_v43, %v779_v41  ;;  %v1031_v15 = vmul.f32 %v2849_v43, %v3202_v8  ;;  %2313 = vmatpush3.msra.mxu1 %v1280_v34  ;;  %v3302_v36 = vmul.f32 0.0, %v3298_v18  ;;  %v3318_v28 = vld [vmem:[%s3551_s6 + $0x3] ss:$0 sm:$0xff] }
  0x88   :  { %2300 = vmatprep.mubr.msk.f32.mxu0 %vm1057_vm1, %v1043_v22  ;;  %v1007_v31 = vadd.f32 %v991_v50, %v969_v16  ;;  %v1029_v6 = vmul.f32 %v2849_v43, %v777_v44  ;;  %v954_v58 = vmul.f32 %v3659_v21, %v777_v44  ;;  %v992_v27 = vmul.f32 %v3660_v0, %v778_v32 }
  0x89   :  { %2310 = vmatmul.mubr.msk.f32.gmra.mxu1 %vm1057_vm1, %v1050_v5  ;;  %v933_v38 = vmul.f32 %v3657_v25, %v778_v32  ;;  %v1279_v25 = vld [vmem:[%s3552_s7] sm:$0xff]  ;;  %v2370_v43 = vmov 0.0   ;;  %vm2083_vm4 = vcmask 1041409   ;;  %vm2183_vm5 = vcmask 122880  }
  0x8a   :  { %v1044_v29 = vadd.f32 %v1029_v6, %v1007_v31  ;;  %v970_v48 = vadd.f32 %v954_v58, %v932_v45  ;;  %2314 = vmatprep.subr.mxu1 %v1279_v25 }
  0x8b   :  { %v971_v55 = vadd.f32 %v955_v23, %v933_v38  ;;  %2315 = vmatpush3.msra.mxu1 %v1279_v25 }
  0x8c   :  { %2301 = vmatmul.mubr.msk.f32.gmra.mxu0 %vm1057_vm1, %v1044_v29  ;;  %v1008_v21 = vadd.f32 %v992_v27, %v970_v48  ;;  %2322 = vmatprep.subr.mxu1 %v2370_v43 }
  0x8d   :  { %v1009_v56 = vadd.f32 %v993_v57, %v971_v55 }
  0x8e   :  { %v1045_v61 = vadd.f32 %v1030_v63, %v1008_v21  ;;  %v1348_v21 = vmul.f32 0.0, %v3318_v28 }
  0x8f   :  { %v1046_v49 = vadd.f32 %v1031_v15, %v1009_v56  ;;  %v3333_v15 = vld [vmem:[%s3550_s5] ss:$0 sm:$0xff] }
  0x90   :  { %2303 = vmatprep.mubr.msk.f32.mxu0 %vm1057_vm1, %v1045_v61 }
  0x91   :  { %2304 = vmatmul.mubr.msk.f32.gmra.mxu0 %vm1057_vm1, %v1046_v49 }
 0x101   :  { %v2290_v8 = vpop.f32.mrf.mxu0 }
 0x102   :  { %v1182_v26 = vadd.f32 %v2290_v8, %v3282_v46 }
 0x103   :  { %v1176_v0 = vpop.f32.mrf.mxu0 }
 0x104   :  { %v1177_v30 = vadd.f32 %v3282_v46, %v1176_v0  ;;  %v1256_v19 = vmax.f32 %v1182_v26, 0.0 }
 0x106   :  { %v1255_v33 = vmax.f32 %v1177_v30, 0.0  ;;  %v1289_v51 = vmul.f32 %v3298_v18, %v1256_v19  ;;  %v1323_v22 = vmul.f32 %v3310_v47, %v1256_v19 }
 0x108   :  { %v1301_v40 = vmul.f32 %v3292_v54, %v1255_v33 }
 0x10a   :  { %v1309_v17 = vadd.f32 %v1301_v40, %v3302_v36 }
 0x10c   :  { %v1331_v6 = vadd.f32 %v1323_v22, %v1309_v17 }
 0x11c   :  { %v2293_v13 = vpop.f32.mrf.mxu0 }
 0x11d   :  { %v1192_v59 = vadd.f32 %v2293_v13, %v3282_v46 }
 0x11e   :  { %v1186_v4 = vpop.f32.mrf.mxu0 }
 0x11f   :  { %v1187_v60 = vadd.f32 %v3282_v46, %v1186_v4  ;;  %v1258_v9 = vmax.f32 %v1192_v59, 0.0  ;;  %v3346_v59 = vmul.f32 0.0, %v3333_v15 }
 0x121   :  { %v2296_v3 = vpop.f32.mrf.mxu0  ;;  %v1257_v1 = vmax.f32 %v1187_v60, 0.0  ;;  %v1290_v20 = vmul.f32 %v3298_v18, %v1258_v9  ;;  %v1324_v31 = vmul.f32 %v3310_v47, %v1258_v9 }
 0x122   :  { %v1202_v62 = vadd.f32 %v2296_v3, %v3282_v46 }
 0x123   :  { %v1196_v24 = vpop.f32.mrf.mxu0  ;;  %v1302_v53 = vmul.f32 %v3292_v54, %v1257_v1  ;;  %v1345_v58 = vmul.f32 %v3318_v28, %v1257_v1 }
 0x124   :  { %v1197_v2 = vadd.f32 %v3282_v46, %v1196_v24  ;;  %v1260_v10 = vmax.f32 %v1202_v62, 0.0 }
 0x125   :  { %v1310_v44 = vadd.f32 %v1302_v53, %v1289_v51  ;;  %v1352_v3 = vadd.f32 %v1345_v58, %v1331_v6 }
 0x126   :  { %v1259_v39 = vmax.f32 %v1197_v2, 0.0  ;;  %v1325_v50 = vmul.f32 %v3310_v47, %v1260_v10  ;;  %v1291_v27 = vmul.f32 %v3298_v18, %v1260_v10  ;;  %v3343_v2 = vld [vmem:[%s3550_s5 + $0x3] ss:$0 sm:$0xff] }
 0x127   :  { %v1332_v63 = vadd.f32 %v1324_v31, %v1310_v44  ;;  %v3351_v9 = vmul.f32 0.0, %v3343_v2 }
 0x128   :  { %v1303_v42 = vmul.f32 %v3292_v54, %v1259_v39  ;;  %v1346_v61 = vmul.f32 %v3318_v28, %v1259_v39 }
 0x12a   :  { %v1311_v12 = vadd.f32 %v1303_v42, %v1290_v20  ;;  %v1353_v62 = vadd.f32 %v1346_v61, %v1332_v63 }
 0x12c   :  { %v1333_v23 = vadd.f32 %v1325_v50, %v1311_v12 }
 0x13e   :  { %v2308_v11 = vpop.f32.mrf.mxu1 }
 0x13f   :  { %v1242_v16 = vadd.f32 %v2308_v11, %v3282_v46 }
 0x140   :  { %v1236_v41 = vpop.f32.mrf.mxu1 }
 0x141   :  { %v2299_v37 = vpop.f32.mrf.mxu0  ;;  %v1237_v38 = vadd.f32 %v3282_v46, %v1236_v41  ;;  %v1268_v55 = vmax.f32 %v1242_v16, 0.0 }
 0x142   :  { %v1212_v14 = vadd.f32 %v2299_v37, %v3282_v46 }
 0x143   :  { %v1206_v7 = vpop.f32.mrf.mxu0  ;;  %v1267_v24 = vmax.f32 %v1237_v38, 0.0  ;;  %v1294_v60 = vmul.f32 %v3298_v18, %v1268_v55  ;;  %v1329_v40 = vmul.f32 %v3310_v47, %v1268_v55 }
 0x144   :  { %v1207_v45 = vadd.f32 %v3282_v46, %v1206_v7  ;;  %v1262_v32 = vmax.f32 %v1212_v14, 0.0 }
 0x145   :  { %v1307_v37 = vmul.f32 %v3292_v54, %v1267_v24  ;;  %v3359_v53 = vmul.f32 %v3318_v28, %v1267_v24 }
 0x146   :  { %v1261_v5 = vmax.f32 %v1207_v45, 0.0  ;;  %v1326_v49 = vmul.f32 %v3310_v47, %v1262_v32 }
 0x148   :  { %v1304_v57 = vmul.f32 %v3292_v54, %v1261_v5  ;;  %v1347_v29 = vmul.f32 %v3318_v28, %v1261_v5 }
 0x149   :  { %v2311_v48 = vpop.f32.mrf.mxu1 }
 0x14a   :  { %v1252_v56 = vadd.f32 %v2311_v48, %v3282_v46  ;;  %v1312_v34 = vadd.f32 %v1304_v57, %v1291_v27  ;;  %v1354_v25 = vadd.f32 %v1347_v29, %v1333_v23  ;;  %v3371_v29 = vld [vmem:[%s3550_s5 + $0x1] ss:$0 sm:$0xff] }
 0x14b   :  { %v1246_v8 = vpop.f32.mrf.mxu1 }
 0x14c   :  { %v1270_v0 = vmax.f32 %v1252_v56, 0.0  ;;  %v2302_v13 = vpop.f32.mrf.mxu0  ;;  %v1247_v4 = vadd.f32 %v3282_v46, %v1246_v8  ;;  %v1334_v30 = vadd.f32 %v1326_v49, %v1312_v34  ;;  %v1360_v42 = vcombine.low %v1352_v3, %v1354_v25 }
 0x14d   :  { %v1222_v39 = vadd.f32 %v2302_v13, %v3282_v46  ;;  %v1361_v19 = vcombine.high %v1352_v3, %v1354_v25  ;;  %v3384_v25 = vld [vmem:[%s3550_s5 + $0x2] ss:$0 sm:$0xff] }
 0x14e   :  { %v1269_v26 = vmax.f32 %v1247_v4, 0.0  ;;  %v1216_v33 = vpop.f32.mrf.mxu0  ;;  %v1355_v1 = vadd.f32 %v1348_v21, %v1334_v30  ;;  %v1330_v20 = vmul.f32 %v3310_v47, %v1270_v0  ;;  %v1368_v45 = vrot.slane %v1360_v42, %v3637_v52 }
 0x14f   :  { %v1217_v11 = vadd.f32 %v3282_v46, %v1216_v33  ;;  %v1264_v51 = vmax.f32 %v1222_v39, 0.0  ;;  %v1375_v22 = vrot.slane %v1361_v19, %v3637_v52 }
 0x150   :  { %v1308_v10 = vmul.f32 %v3292_v54, %v1269_v26  ;;  %v1376_v12 = vcombine.low %v1353_v62, %v1355_v1  ;;  %v1377_v14 = vcombine.high %v1353_v62, %v1355_v1  ;;  %v1351_v63 = vmul.f32 %v3318_v28, %v1269_v26 }
 0x151   :  { %v2305_v7 = vpop.f32.mrf.mxu0  ;;  %v1263_v50 = vmax.f32 %v1217_v11, 0.0  ;;  %v1292_v48 = vmul.f32 %v3298_v18, %v1264_v51  ;;  %v1327_v34 = vmul.f32 %v3310_v47, %v1264_v51 }
 0x152   :  { %v1316_v17 = vadd.f32 %v1308_v10, %v1294_v60  ;;  %v1232_v41 = vadd.f32 %v2305_v7, %v3282_v46  ;;  %v1384_v44 = vrot.slane %v1376_v12, %v3637_v52  ;;  %v1391_v16 = vrot.slane %v1377_v14, %v3637_v52 }
 0x153   :  { %v1226_v32 = vpop.f32.mrf.mxu0  ;;  %v1305_v23 = vmul.f32 %v3292_v54, %v1263_v50 }
 0x154   :  { %v1338_v5 = vadd.f32 %v1330_v20, %v1316_v17  ;;  %v1266_v31 = vmax.f32 %v1232_v41, 0.0  ;;  %v1227_v6 = vadd.f32 %v3282_v46, %v1226_v32  ;;  %v1392_v58 = vcombine.low %v1368_v45, %v1384_v44 }
 0x155   :  { %v1393_v27 = vcombine.high %v1368_v45, %v1384_v44  ;;  %v1408_v38 = vcombine.low %v1375_v22, %v1391_v16  ;;  %v1409_v57 = vcombine.high %v1375_v22, %v1391_v16  ;;  %v1313_v55 = vadd.f32 %v1305_v23, %v3302_v36 }
 0x156   :  { %v1293_v56 = vmul.f32 %v3298_v18, %v1266_v31  ;;  %v1400_v61 = vrot.slane %v1392_v58, %v3642_v35  ;;  %v1359_v0 = vadd.f32 %v1348_v21, %v1338_v5  ;;  %v1265_v36 = vmax.f32 %v1227_v6, 0.0 }
 0x157   :  { %v1416_v46 = vrot.slane %v1408_v38, %v3642_v35  ;;  %v1423_v49 = vrot.slane %v1409_v57, %v3642_v35  ;;  %v1407_v8 = vrot.slane %v1393_v27, %v3642_v35  ;;  %v1328_v24 = vmul.f32 %v3310_v47, %v1266_v31 }
 0x158   :  { %v1315_v13 = vadd.f32 %v1307_v37, %v1293_v56  ;;  %v1424_v18 = vcombine.high %v1400_v61, %v2370_v43  ;;  %v1515_v3 = vmul.f32 %v3371_v29, %v1400_v61  ;;  %v1335_v26 = vadd.f32 %v1327_v34, %v1313_v55 }
 0x159   :  { %v1426_v4 = vcombine.high %v1416_v46, %v2370_v43  ;;  %v1427_v30 = vcombine.high %v1423_v49, %v2370_v43  ;;  %v1517_v60 = vmul.f32 %v3371_v29, %v1416_v46  ;;  %v1518_v21 = vmul.f32 %v3371_v29, %v1423_v49 }
 0x15a   :  { %v1337_v39 = vadd.f32 %v1329_v40, %v1315_v13  ;;  %v1306_v1 = vmul.f32 %v3292_v54, %v1265_v36  ;;  %v1349_v42 = vmul.f32 %v3318_v28, %v1265_v36  ;;  %v1425_v20 = vcombine.high %v1407_v8, %v2370_v43 }
 0x15b   :  { %v1505_v33 = vmul.f32 %v3333_v15, %v1426_v4  ;;  %v1539_v62 = vmul.f32 %v3384_v25, %v1426_v4  ;;  %v1503_v47 = vmul.f32 %v3333_v15, %v1424_v18  ;;  %v1516_v40 = vmul.f32 %v3371_v29, %v1407_v8 }
 0x15c   :  { %v1358_v19 = vadd.f32 %v1351_v63, %v1337_v39  ;;  %v1314_v11 = vadd.f32 %v1306_v1, %v1292_v48  ;;  %v1523_v37 = vadd.f32 %v1515_v3, %v3346_v59  ;;  %v1540_v12 = vmul.f32 %v3384_v25, %v1427_v30 }
 0x15d   :  { %v1526_v10 = vadd.f32 %v1518_v21, %v1505_v33  ;;  %v1356_v14 = vadd.f32 %v1349_v42, %v1335_v26  ;;  %v1504_v7 = vmul.f32 %v3333_v15, %v1425_v20  ;;  %v1537_v54 = vmul.f32 %v3384_v25, %v1424_v18 }
 0x15e   :  { %v1336_v51 = vadd.f32 %v1328_v24, %v1314_v11  ;;  %v1524_v28 = vadd.f32 %v1516_v40, %v1503_v47  ;;  %v1538_v17 = vmul.f32 %v3384_v25, %v1425_v20  ;;  %v1559_v50 = vmul.f32 %v3343_v2, %v1407_v8 }
 0x15f   :  { %v1428_v41 = vcombine.low %v1356_v14, %v1358_v19  ;;  %v1525_v45 = vadd.f32 %v1517_v60, %v1504_v7  ;;  %v1545_v22 = vadd.f32 %v1537_v54, %v1523_v37  ;;  %v1560_v44 = vmul.f32 %v3343_v2, %v1416_v46 }
 0x160   :  { %v1357_v16 = vadd.f32 %v3359_v53, %v1336_v51  ;;  %v1429_v32 = vcombine.high %v1356_v14, %v1358_v19  ;;  %v1546_v5 = vadd.f32 %v1538_v17, %v1524_v28  ;;  %v1548_v23 = vadd.f32 %v1540_v12, %v1526_v10 }
 0x161   :  { %v1561_v31 = vmul.f32 %v3343_v2, %v1423_v49  ;;  %v1566_v6 = vadd.f32 %v1559_v50, %v1545_v22  ;;  %v1547_v58 = vadd.f32 %v1539_v62, %v1525_v45  ;;  %v1436_v63 = vrot.slane %v1428_v41, %v3637_v52 }
 0x162   :  { %v1444_v27 = vcombine.low %v1357_v16, %v1359_v0  ;;  %v1445_v38 = vcombine.high %v1357_v16, %v1359_v0  ;;  %v1567_v57 = vadd.f32 %v1560_v44, %v1546_v5  ;;  %v1569_v48 = vadd.f32 %v3351_v9, %v1548_v23  ;;  %v1710_v16 = vld [vmem:[%s3556_s11] sm:$0xff] }
 0x163   :  { %v1568_v55 = vadd.f32 %v1561_v31, %v1547_v58  ;;  %v1443_v56 = vrot.slane %v1429_v32, %v3637_v52  ;;  %v2241_v23 = vld [vmem:[%s3554_s9] ss:$0 sm:$0xff] }
 0x164   :  { %v1452_v53 = vrot.slane %v1444_v27, %v3637_v52  ;;  %v1459_v61 = vrot.slane %v1445_v38, %v3637_v52  ;;  %v1588_v46 = vcombine.low %v1566_v6, %v1567_v57  ;;  %v1719_v27 = vmul.f32 0.0, %v2241_v23  ;;  %v2242_v38 = vld [vmem:[%s3554_s9 + $0x1] ss:$0 sm:$0xff] }
 0x165   :  { %v1589_v34 = vcombine.low %v1568_v55, %v1569_v48  ;;  %v2243_v55 = vld [vmem:[%s3554_s9 + $0x2] ss:$0 sm:$0xff] }
 0x166   :  { %v1460_v49 = vcombine.low %v1436_v63, %v1452_v53  ;;  %v1461_v8 = vcombine.high %v1436_v63, %v1452_v53  ;;  %v1476_v13 = vcombine.low %v1443_v56, %v1459_v61  ;;  %v1477_v36 = vcombine.high %v1443_v56, %v1459_v61  ;;  %2316 = vmatprep.mubr.msk.f32.mxu1 %vm1592_vm2, %v1588_v46  ;;  %v2244_v56 = vld [vmem:[%s3554_s9 + $0x3] ss:$0 sm:$0xff] }
 0x167   :  { %2317 = vmatmul.mubr.msk.f32.vlgmr.msra.gmra.mxu1 %vm1592_vm2, %v1589_v34 }
 0x168   :  { %v1468_v0 = vrot.slane %v1460_v49, %v3642_v35  ;;  %v1475_v18 = vrot.slane %v1461_v8, %v3642_v35  ;;  %v1484_v4 = vrot.slane %v1476_v13, %v3642_v35  ;;  %v1491_v3 = vrot.slane %v1477_v36, %v3642_v35 }
 0x169   :  { %v1757_v8 = vmul.f32 0.0, %v2244_v56 }
 0x16a   :  { %v1492_v24 = vcombine.high %v1468_v0, %v2370_v43  ;;  %v1519_v30 = vmul.f32 %v3371_v29, %v1468_v0  ;;  %v1493_v60 = vcombine.high %v1475_v18, %v2370_v43  ;;  %v1494_v39 = vcombine.high %v1484_v4, %v2370_v43 }
 0x16b   :  { %v1495_v26 = vcombine.high %v1491_v3, %v2370_v43  ;;  %v1520_v21 = vmul.f32 %v3371_v29, %v1475_v18  ;;  %v1521_v20 = vmul.f32 %v3371_v29, %v1484_v4  ;;  %v1522_v47 = vmul.f32 %v3371_v29, %v1491_v3 }
 0x16c   :  { %v1506_v33 = vmul.f32 %v3333_v15, %v1492_v24  ;;  %v1527_v62 = vadd.f32 %v1519_v30, %v3346_v59  ;;  %v1541_v1 = vmul.f32 %v3384_v25, %v1492_v24  ;;  %v1507_v42 = vmul.f32 %v3333_v15, %v1493_v60 }
 0x16d   :  { %v1508_v19 = vmul.f32 %v3333_v15, %v1494_v39  ;;  %v1542_v11 = vmul.f32 %v3384_v25, %v1493_v60  ;;  %v1543_v14 = vmul.f32 %v3384_v25, %v1494_v39  ;;  %v1544_v59 = vmul.f32 %v3384_v25, %v1495_v26  ;;  %v1711_v25 = vld [vmem:[%s3556_s11 + $0x8] sm:$0xff] }
 0x16e   :  { %v1528_v10 = vadd.f32 %v1520_v21, %v1506_v33  ;;  %v1549_v40 = vadd.f32 %v1541_v1, %v1527_v62  ;;  %v1529_v37 = vadd.f32 %v1521_v20, %v1507_v42  ;;  %v1563_v54 = vmul.f32 %v3343_v2, %v1475_v18  ;;  %2323 = vmatpush3.msra.mxu1 %v1711_v25  ;;  %v2247_v25 = vld [vmem:[%s3555_s10 + $0x2] ss:$0 sm:$0xff] }
 0x16f   :  { %v1530_v12 = vadd.f32 %v1522_v47, %v1508_v19  ;;  %v1564_v51 = vmul.f32 %v3343_v2, %v1484_v4  ;;  %v1565_v17 = vmul.f32 %v3343_v2, %v1491_v3  ;;  %2324 = vmatprep.subr.mxu1 %v2370_v43  ;;  %v2236_v2 = vld [vmem:[%s3553_s8] ss:$0 sm:$0xff] }
 0x170   :  { %v1550_v7 = vadd.f32 %v1542_v11, %v1528_v10  ;;  %v1551_v15 = vadd.f32 %v1543_v14, %v1529_v37  ;;  %v1570_v29 = vadd.f32 %v1563_v54, %v1549_v40  ;;  %2325 = vmatpush3.msra.mxu1 %v1710_v16 }
 0x171   :  { %v1552_v28 = vadd.f32 %v1544_v59, %v1530_v12  ;;  %2329 = vmatprep.subr.mxu1 %v2370_v43 }
 0x172   :  { %v1571_v50 = vadd.f32 %v1564_v51, %v1550_v7  ;;  %v1572_v41 = vadd.f32 %v1565_v17, %v1551_v15  ;;  %v2245_v15 = vld [vmem:[%s3555_s10] ss:$0 sm:$0xff] }
 0x173   :  { %v1573_v45 = vadd.f32 %v3351_v9, %v1552_v28  ;;  %v2246_v28 = vld [vmem:[%s3555_s10 + $0x1] ss:$0 sm:$0xff] }
 0x174   :  { %v1590_v22 = vcombine.low %v1570_v29, %v1571_v50 }
 0x175   :  { %v1591_v44 = vcombine.low %v1572_v41, %v1573_v45 }
 0x176   :  { %2319 = vmatprep.mubr.msk.f32.mxu1 %vm1592_vm2, %v1590_v22  ;;  %v1833_v22 = vmul.f32 0.0, %v2245_v15 }
 0x177   :  { %2320 = vmatmul.mubr.msk.f32.gmra.mxu1 %vm1592_vm2, %v1591_v44 }
 0x178   :  { %2326 = vmatprep.mubr.msk.f32.mxu1 %vm2371_vm3, %v2370_v43 }
 0x227   :  { %v2318_v9 = vpop.f32.mrf.mxu1 }
 0x228   :  { %v1673_v32 = vadd.f32 %v2318_v9, %v2236_v2 }
 0x229   :  { %v1667_v5 = vpop.f32.mrf.mxu1 }
 0x22a   :  { %v1687_v31 = vmax.f32 %v1673_v32, 0.0  ;;  %v1668_v6 = vadd.f32 %v2236_v2, %v1667_v5 }
 0x22c   :  { %v1686_v58 = vmax.f32 %v1668_v6, 0.0  ;;  %v1695_v57 = vcombine.high %v1687_v31, %v1687_v31  ;;  %v1729_v53 = vmul.f32 %v2242_v38, %v1687_v31  ;;  %v1756_v0 = vmul.f32 %v2244_v56, %v1687_v31 }
 0x22e   :  { %v1694_v48 = vcombine.high %v1686_v58, %v1686_v58  ;;  %v1728_v63 = vmul.f32 %v2242_v38, %v1686_v58  ;;  %v1743_v49 = vmul.f32 %v2243_v55, %v1695_v57 }
 0x230   :  { %v1720_v61 = vmul.f32 %v2241_v23, %v1694_v48  ;;  %v1732_v46 = vadd.f32 %v1728_v63, %v1719_v27  ;;  %v1742_v34 = vmul.f32 %v2243_v55, %v1694_v48 }
 0x232   :  { %v1733_v13 = vadd.f32 %v1729_v53, %v1720_v61  ;;  %v1746_v36 = vadd.f32 %v1742_v34, %v1732_v46 }
 0x234   :  { %v1747_v18 = vadd.f32 %v1743_v49, %v1733_v13  ;;  %v1759_v4 = vadd.f32 %v1756_v0, %v1746_v36 }
 0x236   :  { %v1767_v3 = vadd.f32 %v1757_v8, %v1747_v18  ;;  %v1766_v39 = vrot.slane %v1759_v4, %v3637_v52 }
 0x237   :  { %v2321_v24 = vpop.f32.mrf.mxu1 }
 0x238   :  { %v1774_v30 = vrot.slane %v1767_v3, %v3637_v52  ;;  %v1683_v60 = vadd.f32 %v2321_v24, %v2236_v2 }
 0x239   :  { %v1677_v26 = vpop.f32.mrf.mxu1 }
 0x23a   :  { %v1678_v33 = vadd.f32 %v2236_v2, %v1677_v26  ;;  %v1775_v21 = vcombine.low %v1766_v39, %v1774_v30  ;;  %v1689_v62 = vmax.f32 %v1683_v60, 0.0  ;;  %v1776_v10 = vcombine.high %v1766_v39, %v1774_v30 }
 0x23c   :  { %v1688_v1 = vmax.f32 %v1678_v33, 0.0  ;;  %v1783_v42 = vrot.slane %v1775_v21, %v3642_v35  ;;  %v1697_v19 = vcombine.high %v1689_v62, %v1689_v62  ;;  %v1731_v11 = vmul.f32 %v2242_v38, %v1689_v62 }
 0x23d   :  { %v1758_v14 = vmul.f32 %v2244_v56, %v1689_v62  ;;  %v1790_v17 = vrot.slane %v1776_v10, %v3642_v35 }
 0x23e   :  { %v1696_v20 = vcombine.high %v1688_v1, %v1688_v1  ;;  %v1730_v47 = vmul.f32 %v2242_v38, %v1688_v1  ;;  %v1791_v59 = vcombine.high %v1783_v42, %v2370_v43  ;;  %v1745_v7 = vmul.f32 %v2243_v55, %v1697_v19  ;;  %v2008_v19 = vld [vmem:[%s3560_s15 + $0x8] sm:$0xff] }
 0x23f   :  { %v1842_v44 = vmul.f32 %v2246_v28, %v1783_v42  ;;  %v1792_v16 = vcombine.high %v1790_v17, %v2370_v43  ;;  %v1843_v2 = vmul.f32 %v2246_v28, %v1790_v17 }
 0x240   :  { %v1721_v40 = vmul.f32 %v2241_v23, %v1696_v20  ;;  %v1734_v37 = vadd.f32 %v1730_v47, %v1719_v27  ;;  %v1744_v12 = vmul.f32 %v2243_v55, %v1696_v20  ;;  %v1834_v41 = vmul.f32 %v2245_v15, %v1791_v59  ;;  %v2248_v27 = vld [vmem:[%s3555_s10 + $0x3] ss:$0 sm:$0xff]  ;;  %v2249_v47 = vld [vmem:[%s3557_s12] ss:$0 sm:$0xff] }
 0x241   :  { %v1846_v6 = vadd.f32 %v1842_v44, %v1833_v22  ;;  %v1856_v58 = vmul.f32 %v2247_v25, %v1791_v59  ;;  %v1857_v38 = vmul.f32 %v2247_v25, %v1792_v16  ;;  %v1871_v63 = vmul.f32 0.0, %v2248_v27  ;;  %v2007_v20 = vld [vmem:[%s3560_s15] sm:$0xff] }
 0x242   :  { %v1735_v54 = vadd.f32 %v1731_v11, %v1721_v40  ;;  %v1748_v51 = vadd.f32 %v1744_v12, %v1734_v37  ;;  %v1847_v5 = vadd.f32 %v1843_v2, %v1834_v41  ;;  %v1870_v36 = vmul.f32 %v2248_v27, %v1790_v17  ;;  %v2251_v40 = vld [vmem:[%s3559_s14] ss:$0 sm:$0xff] }
 0x243   :  { %v1860_v46 = vadd.f32 %v1856_v58, %v1846_v6  ;;  %v2001_v58 = vld [vmem:[%s3558_s13 + $0x2] sm:$0x1] }
 0x244   :  { %v1749_v29 = vadd.f32 %v1745_v7, %v1735_v54  ;;  %v1793_v50 = vadd.f32 %v1758_v14, %v1748_v51  ;;  %v1861_v55 = vadd.f32 %v1857_v38, %v1847_v5  ;;  %v2252_v14 = vld [vmem:[%s3559_s14 + $0x1] ss:$0 sm:$0xff]  ;;  %v2254_v54 = vld [vmem:[%s3559_s14 + $0x3] ss:$0 sm:$0xff]  ;;  %v2016_v51 = vmul.f32 0.0, %v2251_v40 }
 0x245   :  { %v1873_v24 = vadd.f32 %v1870_v36, %v1860_v46 }
 0x246   :  { %v1801_v45 = vadd.f32 %v1757_v8, %v1749_v29  ;;  %v1800_v9 = vrot.slane %v1793_v50, %v3637_v52  ;;  %v1874_v3 = vadd.f32 %v1871_v63, %v1861_v55  ;;  %v2043_v50 = vmul.f32 0.0, %v2254_v54 }
 0x248   :  { %v1808_v32 = vrot.slane %v1801_v45, %v3637_v52  ;;  %v1887_v33 = vcombine.low %v1873_v24, %v1874_v3  ;;  %v2255_v3 = vld [vmem:[%s3561_s16] ss:$0 sm:$0xff] }
 0x24a   :  { %v1809_v23 = vcombine.low %v1800_v9, %v1808_v32  ;;  %v1810_v31 = vcombine.high %v1800_v9, %v1808_v32  ;;  %v1895_v62 = vrot.slane %v1887_v33, %v3637_v52  ;;  %v1999_v9 = vld [vmem:[%s3558_s13] sm:$0x1] }
 0x24b   :  { %v2062_v6 = vmul.f32 0.0, %v1999_v9 }
 0x24c   :  { %v1817_v57 = vrot.slane %v1809_v23, %v3642_v35  ;;  %v1824_v48 = vrot.slane %v1810_v31, %v3642_v35 }
 0x24e   :  { %v1825_v56 = vcombine.high %v1817_v57, %v2370_v43  ;;  %v1826_v53 = vcombine.high %v1824_v48, %v2370_v43  ;;  %v1844_v61 = vmul.f32 %v2246_v28, %v1817_v57  ;;  %v1845_v49 = vmul.f32 %v2246_v28, %v1824_v48 }
 0x24f   :  { %v1872_v60 = vmul.f32 %v2248_v27, %v1824_v48 }
 0x250   :  { %v1835_v34 = vmul.f32 %v2245_v15, %v1825_v56  ;;  %v1848_v8 = vadd.f32 %v1844_v61, %v1833_v22  ;;  %v1858_v13 = vmul.f32 %v2247_v25, %v1825_v56  ;;  %v1859_v18 = vmul.f32 %v2247_v25, %v1826_v53  ;;  %v2253_v15 = vld [vmem:[%s3559_s14 + $0x2] ss:$0 sm:$0xff]  ;;  %v2002_v53 = vld [vmem:[%s3558_s13 + $0x3] sm:$0x1] }
 0x252   :  { %v1849_v0 = vadd.f32 %v1845_v49, %v1835_v34  ;;  %v1862_v4 = vadd.f32 %v1858_v13, %v1848_v8  ;;  %v2071_v8 = vmul.f32 0.0, %v2002_v53 }
 0x254   :  { %v1863_v30 = vadd.f32 %v1859_v18, %v1849_v0  ;;  %v1875_v39 = vadd.f32 %v1872_v60, %v1862_v4  ;;  %v3668_v60 = vld [vmem:[#allocation5_spill] sm:$0xff] }
 0x256   :  { %v1876_v26 = vadd.f32 %v1871_v63, %v1863_v30 }
 0x258   :  { %v1888_v21 = vcombine.low %v1875_v39, %v1876_v26 }
 0x25a   :  { %v1902_v1 = vrot.slane %v1888_v21, %v3637_v52 }
 0x25c   :  { %v1903_v42 = vcombine.low %v1895_v62, %v1902_v1 }
 0x25e   :  { %2327 = vmatmul.mubr.msk.f32.vlgmr.msra.gmra.mxu1 %vm1592_vm2, %v1903_v42 }
 0x25f   :  { %2333 = vmatprep.mubr.msk.f32.mxu1 %vm2371_vm3, %v2370_v43  ;;  %2330 = vmatpush3.msra.mxu1 %v2008_v19 }
 0x260   :  { %2331 = vmatprep.subr.mxu1 %v2370_v43 }
 0x261   :  { %2332 = vmatpush3.msra.mxu1 %v2007_v20 }
 0x31e   :  { %v1972_v10 = vpop.f32.mrf.mxu1 }
 0x31f   :  { %v1973_v11 = vadd.f32 %v2249_v47, %v1972_v10 }
 0x320   :  { %v2328_v37 = vpop.f32.mrf.mxu1 }
 0x321   :  { %v1976_v12 = vmax.f32 %v1973_v11, 0.0 }
 0x323   :  { %v1978_v59 = vcombine.high %v1976_v12, %v1976_v12  ;;  %v1985_v7 = vrot.slane %v1976_v12, %v3637_v52 }
 0x325   :  { %v1992_v28 = vrot.slane %v1978_v59, %v3637_v52  ;;  %v1993_v17 = vcombine.high %v1985_v7, %v1985_v7  ;;  %v2023_v29 = vmul.f32 %v2252_v14, %v1985_v7  ;;  %v2000_v52 = vld [vmem:[%s3558_s13 + $0x1] sm:$0x1]  ;;  %s2373_s13 = smov [#allocation2]  }
 0x326   :  { %s2191_s29 = sshll.u32 %s2373_s13, 4  ;;  %s2192_s29 = int_to_ptr.vmem [resolvable:$true] %s2191_s29 }
 0x327   :  { %v1994_v41 = vcombine.high %v1992_v28, %v1992_v28  ;;  %v2024_v45 = vmul.f32 %v2252_v14, %v1992_v28  ;;  %v2025_v22 = vadd.f32 %v2023_v29, %v2016_v51  ;;  %v2033_v44 = vmul.f32 %v2253_v15, %v1993_v17  ;;  %s2346_s30 = scalar_lea.vmem %s2192_s29, 32  ;;  %p2351_p1 = scmp.lt.s32.totalorder %s2192_s29, %s2192_s29 }
 0x328   :  { %p2347_p0 = scmp.ne.s32.totalorder %s2192_s29, %s2346_s30  ;;  %p2352_p2 = scmp.lt.s32.totalorder %s2346_s30, %s2346_s30 }
 0x329   :  { %v2026_v25 = vadd.f32 %v2024_v45, %v2016_v51  ;;  %v2034_v16 = vmul.f32 %v2253_v15, %v1994_v41  ;;  %v2035_v2 = vadd.f32 %v2033_v44, %v2025_v22 }
 0x32a   :  { %p2353_p3 = por %p2352_p2, %p2351_p1 }
 0x32b   :  { %v2036_v32 = vadd.f32 %v2034_v16, %v2026_v25  ;;  %v2044_v5 = vadd.f32 %v2043_v50, %v2035_v2 }
 0x32c   :  { %p2354_p4 = pnand %p2353_p3, %p2347_p0 }
 0x32d   :  { %v2051_v23 = vrot.slane %v2044_v5, %v3642_v35  ;;  %v2053_v31 = vadd.f32 %v2043_v50, %v2036_v32 }
 0x32f   :  { %v2052_v27 = vcombine.high %v2051_v23, %v2370_v43  ;;  %v2060_v38 = vrot.slane %v2053_v31, %v3642_v35  ;;  %v2063_v57 = vmul.f32 %v2051_v23, %v2000_v52 }
 0x331   :  { %v2061_v48 = vcombine.high %v2060_v38, %v2370_v43  ;;  %v2064_v63 = vmul.f32 %v2060_v38, %v2000_v52  ;;  %v2065_v55 = vadd.f32 %v2063_v57, %v2062_v6  ;;  %v2067_v56 = vmul.f32 %v2052_v27, %v2001_v58 }
 0x332   :  { %v2372_v43 = vmov 1966171168  }
 0x333   :  { %v2066_v61 = vadd.f32 %v2064_v63, %v2062_v6  ;;  %v2068_v46 = vmul.f32 %v2061_v48, %v2001_v58  ;;  %v2069_v34 = vadd.f32 %v2067_v56, %v2065_v55  ;;  %v2160_v18 = vunpack.c.l.s4 %v2372_v43 }
 0x335   :  { %v2070_v49 = vadd.f32 %v2068_v46, %v2066_v61  ;;  %v2072_v36 = vadd.f32 %v2071_v8, %v2069_v34  ;;  %v2161_v4 = vunpack.c.0.s8 %v2160_v18 }
 0x337   :  { %v2073_v13 = vadd.f32 %v2071_v8, %v2070_v49  ;;  %v2164_v39 = vsub.s32 %v2161_v4, %v3668_v60 }
 0x339   :  { %v2082_v0 = vrot.slane %v2073_v13, 7 }
 0x33b   :  { %v2084_v35 = vsel %vm2083_vm4, %v2082_v0, %v2072_v36 }
 0x33c   :  { %2334 = vmatmul.mubr.msk.f32.vlgmr.msra.gmra.mxu1 %vm1592_vm2, %v2084_v35 }
 0x3fc   :  { %v2153_v24 = vpop.f32.mrf.mxu1 }
 0x3fd   :  { %v2154_v30 = vadd.f32 %v2255_v3, %v2153_v24 }
 0x3fe   :  { %v2335_v26 = vpop.f32.mrf.mxu1 }
 0x3ff   :  { %v2157_v33 = vmax.f32 %v2154_v30, 0.0 }
 0x401   :  { %v2165_v21 = vrot.slane %v2157_v33, %v2164_v39 }
 0x403   :  { %v2166_v62 = vcombine.high %v2165_v21, %v2165_v21  ;;  %v2173_v1 = vrot.slane %v2165_v21, %v2164_v39 }
 0x405   :  { %v2180_v42 = vrot.slane %v2166_v62, %v2164_v39  ;;  %2184 = vst.msk [vmem:[#allocation2] sm:$0x1] %vm2183_vm5, %v2173_v1 }
 0x407   :  { %2185 = vst.msk [vmem:[#allocation2 + $0x1] sm:$0x1] %vm2183_vm5, %v2180_v42 }
 0x408   :  { %2357 = shalt.err (!%p2354_p4)
}
 0x409   :  { %s2374_s16 = smov 16   ;;  %s2375_s18 = smov 1  }
 0x40a   :  { %2197 = dma.vmem_to_hbm [thread:$0]  %s2192_s29, 32, %s3562_s17, [#allocation3], %s2374_s16, %s2374_s16, %s2375_s18  }
 0x40b   :  { %2366 = dma.done.wait [#allocation3], 32  }
 0x40c   :  { %2367 = vsyncadd [#allocation3], 4294967264 }
 0x40d   :  { %2201 = vsyncpa [#allocation3], 1 }

</bundles_post_ra>
